<compile_context>
chip_gen: v7x
topology: tpu7x:2x2x1
jax: 0.10.0
libtpu: 0.0.40
codegen_flags: <defaults>
</compile_context>

<pallas_src>
import jax
import jax.numpy as jnp
from jax.experimental import pallas as pl
from jax.experimental.pallas import tpu as pltpu

EMB = 32
SMALL_SLICES = [(0, 33), (33, 66), (66, 110), (110, 133)]  # AcPred, AcRec, VWM, OiT
SMALL_TOTAL = 133
SMALL_PAD = 256            # lane-group aligned slice width for the short branches
Z_DIM = 1024
IN_TOTAL = SMALL_TOTAL + Z_DIM   # 1157
BN_EPS = 1e-5
_MXU_MIN_ROWS = 128        # M that fills one MXU pass on any generation


def _round_up(n, m):
    return ((n + m - 1) // m) * m


def _default_batch_tile():
    """128 on v5e (128-row MXU), 256 on v6e/v7x (256-row MXU)."""
    try:
        kind = jax.devices()[0].device_kind.lower()
    except Exception:
        return 256
    if "v5 lite" in kind or "v5e" in kind or "v5litepod" in kind:
        return 128
    return 256


def _dqn_kernel(x_ref,
                ws_ref, ts_ref,            # short branches  (256 -> 128, block-diag)
                wz_ref, tz_ref,            # Z branch        (1157 -> 32, top rows zero)
                w1s_ref, w1z_ref, t1_ref,  # hidden1 (row-split)   160 -> 512
                w2_ref, t2_ref,            # hidden2               512 -> 512
                w3_ref, t3_ref,            # output_layer[0:3]     512 -> 256
                w4_ref, b4_ref,            # output_layer[3]       256 -> OUT_PAD
                o_ref):
    def dot(h, w_ref):
        # bf16 x bf16 on the MXU, f32 accumulation.
        return jnp.dot(h.astype(jnp.bfloat16), w_ref[...],
                       preferred_element_type=jnp.float32)

    x = x_ref[...].astype(jnp.bfloat16)                                  # no-op if bf16
    hs = jnp.maximum(dot(x[:, :SMALL_PAD], ws_ref) + ts_ref[...], 0.0)   # [TB, 128]
    hz = jnp.maximum(dot(x, wz_ref) + tz_ref[...], 0.0)                  # [TB, 32]
    h = jnp.maximum(dot(hs, w1s_ref) + dot(hz, w1z_ref) + t1_ref[...], 0.0)  # [TB, 512]
    h = jnp.maximum(dot(h, w2_ref) + t2_ref[...], 0.0)                   # [TB, 512]
    h = jnp.maximum(dot(h, w3_ref) + t3_ref[...], 0.0)                   # [TB, 256]
    o_ref[...] = (dot(h, w4_ref) + b4_ref[...]).astype(o_ref.dtype)      # [TB, OUT_PAD]


def dqn_forward(x, params, *, batch_tile=None, input_buffers=2):
    B = x.shape[0]
    assert x.shape[1] == IN_TOTAL
    out_dim = params["out_dim"]
    out_pad = params["w4"].shape[1]

    if batch_tile is None:
        batch_tile = _default_batch_tile()

    # Tile selection: multiple of 16 (bf16 sublane packing); >= 2 grid steps
    # once the batch can fill the MXU twice so both v7x TensorCores engage.
    n_tiles = max(1, pl.cdiv(B, batch_tile))
    if B >= 2 * _MXU_MIN_ROWS and n_tiles < 2:
        n_tiles = 2
    TB = _round_up(pl.cdiv(B, n_tiles), 16)
    B_pad = n_tiles * TB

    # Only ragged batches pay a pad copy; otherwise x streams untouched.
    x_pad = x if B_pad == B else jnp.pad(x, ((0, B_pad - B), (0, 0)))

    const_args = (params["ws"], params["ts"],
                  params["wz"], params["tz"],
                  params["w1s"], params["w1z"], params["t1"],
                  params["w2"], params["t2"],
                  params["w3"], params["t3"],
                  params["w4"], params["b4"])

    x_spec_kwargs = {}
    if input_buffers != 2:
        # Optional sweep knob (v6e): deeper buffering on the input stream.
        x_spec_kwargs["pipeline_mode"] = pl.Buffered(input_buffers)
    x_spec = pl.BlockSpec((TB, IN_TOTAL), lambda i: (i, 0), **x_spec_kwargs)

    def const_spec(a):
        # Full-array block, same block index every step -> stays VMEM-resident.
        return pl.BlockSpec(a.shape, lambda i: (0, 0))

    flops = 2 * B_pad * (SMALL_PAD * 4 * EMB + IN_TOTAL * EMB
                         + 4 * EMB * 512 + EMB * 512
                         + 512 * 512 + 512 * 256 + 256 * out_pad)
    weight_bytes = sum(int(a.size) * a.dtype.itemsize for a in const_args)
    io_bytes = int(x_pad.size) * x_pad.dtype.itemsize + B_pad * out_pad * 2
    cost = pl.CostEstimate(flops=flops, transcendentals=0,
                           bytes_accessed=weight_bytes + io_bytes)

    out = pl.pallas_call(
        _dqn_kernel,
        out_shape=jax.ShapeDtypeStruct((B_pad, out_pad), jnp.bfloat16),
        grid_spec=pltpu.PrefetchScalarGridSpec(
            num_scalar_prefetch=0,
            grid=(n_tiles,),
            in_specs=[x_spec] + [const_spec(a) for a in const_args],
            out_specs=pl.BlockSpec((TB, out_pad), lambda i: (i, 0)),
        ),
        compiler_params=pltpu.CompilerParams(
            dimension_semantics=("parallel",)),   # batch tiles across TCs (v7x)
        cost_estimate=cost,
    )(x_pad, *const_args)

    return out[:B, :out_dim].astype(jnp.float32)


def init_params(key, output_size):
    """Synthetic parameters matching the torch module's shapes.

    BatchNorm1d is folded in eval mode (running stats): scale into the weight
    columns, Linear bias + BN shift into one per-feature f32 shift vector.
    # TODO(synk): training-mode (batch-stats) BatchNorm is not representable
    # in this folded inference kernel.
    """
    assert output_size >= 1
    out_pad = _round_up(output_size, 128)   # lane-dense output slab

    keys = iter(jax.random.split(key, 64))

    def linear(fan_in, fan_out):
        w = 0.05 * jax.random.normal(next(keys), (fan_in, fan_out), jnp.float32)
        b = 0.05 * jax.random.normal(next(keys), (fan_out,), jnp.float32)
        return w, b

    def bn(n):
        gamma = 1.0 + 0.1 * jax.random.normal(next(keys), (n,), jnp.float32)
        beta = 0.1 * jax.random.normal(next(keys), (n,), jnp.float32)
        rmean = 0.1 * jax.random.normal(next(keys), (n,), jnp.float32)
        rvar = jax.random.uniform(next(keys), (n,), jnp.float32, 0.5, 1.5)
        return gamma, beta, rmean, rvar

    def fold(w, b, gamma, beta, rmean, rvar):
        scale = gamma / jnp.sqrt(rvar + BN_EPS)
        return w * scale[None, :], ((b - rmean) * scale + beta)[None, :]

    # Four short branches -> one block-diagonal weight, zero-padded to 256 rows
    # so the kernel can take a lane-group-aligned x[:, :256] slice.
    ws = jnp.zeros((SMALL_PAD, 4 * EMB), jnp.float32)
    ts = jnp.zeros((1, 4 * EMB), jnp.float32)
    for bi, (lo, hi) in enumerate(SMALL_SLICES):
        w, b = linear(hi - lo, EMB)
        wf, sh = fold(w, b, *bn(EMB))
        ws = ws.at[lo:hi, bi * EMB:(bi + 1) * EMB].set(wf)
        ts = ts.at[:, bi * EMB:(bi + 1) * EMB].set(sh)

    # Z branch: 1024 -> 32, stored with 133 leading zero rows so the kernel can
    # feed the full (TB, 1157) x block without an unaligned slice.
    w, b = linear(Z_DIM, EMB)
    wzf, tz = fold(w, b, *bn(EMB))
    wz = jnp.zeros((IN_TOTAL, EMB), jnp.float32).at[SMALL_TOTAL:].set(wzf)

    def fused_layer(fan_in, fan_out):
        w, b = linear(fan_in, fan_out)
        return fold(w, b, *bn(fan_out))

    w1, t1 = fused_layer(5 * EMB, 512)         # hidden1
    w1s, w1z = w1[:4 * EMB], w1[4 * EMB:]      # row-split: small-branch / Z rows
    w2, t2 = fused_layer(512, 512)             # hidden2
    w3, t3 = fused_layer(512, 256)             # output_layer Linear+BN+ReLU
    w4, b4 = linear(256, output_size)          # final Linear

    w4p = jnp.zeros((256, out_pad), jnp.float32).at[:, :output_size].set(w4)
    b4p = jnp.zeros((1, out_pad), jnp.float32).at[:, :output_size].set(b4)

    bf = lambda a: a.astype(jnp.bfloat16)
    return dict(ws=bf(ws), ts=ts,
                wz=bf(wz), tz=tz,
                w1s=bf(w1s), w1z=bf(w1z), t1=t1,
                w2=bf(w2), t2=t2,
                w3=bf(w3), t3=t3,
                w4=bf(w4p), b4=b4p,
                out_dim=output_size)


def reference_forward(x, p):
    """Pure-JAX reference (f32 activation math on the bf16-rounded weights)."""
    f32 = lambda a: a.astype(jnp.float32)
    hs = jnp.maximum(x[:, :SMALL_PAD] @ f32(p["ws"]) + p["ts"], 0.0)
    hz = jnp.maximum(x @ f32(p["wz"]) + p["tz"], 0.0)
    h = jnp.maximum(hs @ f32(p["w1s"]) + hz @ f32(p["w1z"]) + p["t1"], 0.0)
    h = jnp.maximum(h @ f32(p["w2"]) + p["t2"], 0.0)
    h = jnp.maximum(h @ f32(p["w3"]) + p["t3"], 0.0)
    return (h @ f32(p["w4"]) + p["b4"])[:, :p["out_dim"]]


if __name__ == "__main__":
    key = jax.random.PRNGKey(0)
    k_x, k_p = jax.random.split(key)

    # Tiny-batch demo: single grid step, latency/overhead bound by design.
    # For throughput, batch many inference requests into one dqn_forward call.
    batch = 8
    output_size = 10
    # x: [batch, 1157] = 33 (AcPred) + 33 (AcRec) + 44 (VWM) + 23 (OiT) + 1024 (Z)
    x = jax.random.normal(k_x, (batch, IN_TOTAL), jnp.float32)
    params = init_params(k_p, output_size)

    out = jax.block_until_ready(dqn_forward(x, params))
    ref = reference_forward(x, params)

    assert out.shape == (batch, output_size)
    # bf16 weights + bf16 activation casts + bf16 output slab -> relaxed tolerance.
    assert jnp.allclose(out, ref, atol=5e-2, rtol=5e-2), "Pallas output mismatch vs reference"

    print("KERNEL_OK")
</pallas_src>

<mosaic_0001>
module attributes {stable_mosaic.version = 11 : i64} {
  func.func @_dqn_kernel(%arg0: i32, %arg1: memref<16x1157xf32, #tpu.memory_space<vmem>>, %arg2: memref<256x128xbf16, #tpu.memory_space<vmem>>, %arg3: memref<1x128xf32, #tpu.memory_space<vmem>>, %arg4: memref<1157x32xbf16, #tpu.memory_space<vmem>>, %arg5: memref<1x32xf32, #tpu.memory_space<vmem>>, %arg6: memref<128x512xbf16, #tpu.memory_space<vmem>>, %arg7: memref<32x512xbf16, #tpu.memory_space<vmem>>, %arg8: memref<1x512xf32, #tpu.memory_space<vmem>>, %arg9: memref<512x512xbf16, #tpu.memory_space<vmem>>, %arg10: memref<1x512xf32, #tpu.memory_space<vmem>>, %arg11: memref<512x256xbf16, #tpu.memory_space<vmem>>, %arg12: memref<1x256xf32, #tpu.memory_space<vmem>>, %arg13: memref<256x128xbf16, #tpu.memory_space<vmem>>, %arg14: memref<1x128xf32, #tpu.memory_space<vmem>>, %arg15: memref<16x128xbf16, #tpu.memory_space<vmem>>) attributes {dimension_semantics = [#tpu.dimension_semantics<parallel>], iteration_bounds = array<i64: 1>, scalar_prefetch = 0 : i64, scratch_operands = 0 : i64, tpu.core_type = #tpu.core_type<tc>, window_params = [{transform_indices = @transform_0, window_bounds = array<i64: 16, 1157>}, {pipeline_mode = #tpu.pipeline_mode<synchronous>, transform_indices = @transform_1, window_bounds = array<i64: 256, 128>}, {pipeline_mode = #tpu.pipeline_mode<synchronous>, transform_indices = @transform_2, window_bounds = array<i64: 1, 128>}, {pipeline_mode = #tpu.pipeline_mode<synchronous>, transform_indices = @transform_3, window_bounds = array<i64: 1157, 32>}, {pipeline_mode = #tpu.pipeline_mode<synchronous>, transform_indices = @transform_4, window_bounds = array<i64: 1, 32>}, {pipeline_mode = #tpu.pipeline_mode<synchronous>, transform_indices = @transform_5, window_bounds = array<i64: 128, 512>}, {pipeline_mode = #tpu.pipeline_mode<synchronous>, transform_indices = @transform_6, window_bounds = array<i64: 32, 512>}, {pipeline_mode = #tpu.pipeline_mode<synchronous>, transform_indices = @transform_7, window_bounds = array<i64: 1, 512>}, {pipeline_mode = #tpu.pipeline_mode<synchronous>, transform_indices = @transform_8, window_bounds = array<i64: 512, 512>}, {pipeline_mode = #tpu.pipeline_mode<synchronous>, transform_indices = @transform_9, window_bounds = array<i64: 1, 512>}, {pipeline_mode = #tpu.pipeline_mode<synchronous>, transform_indices = @transform_10, window_bounds = array<i64: 512, 256>}, {pipeline_mode = #tpu.pipeline_mode<synchronous>, transform_indices = @transform_11, window_bounds = array<i64: 1, 256>}, {pipeline_mode = #tpu.pipeline_mode<synchronous>, transform_indices = @transform_12, window_bounds = array<i64: 256, 128>}, {pipeline_mode = #tpu.pipeline_mode<synchronous>, transform_indices = @transform_13, window_bounds = array<i64: 1, 128>}, {transform_indices = @transform_14, window_bounds = array<i64: 16, 128>}]} {
    %c0 = arith.constant 0 : index
    %c0_0 = arith.constant 0 : index
    %0 = vector.load %arg1[%c0, %c0_0] : memref<16x1157xf32, #tpu.memory_space<vmem>>, vector<16x1157xf32>
    %1 = arith.truncf %0 : vector<16x1157xf32> to vector<16x1157xbf16>
    %2 = vector.extract_strided_slice %1 {offsets = [0, 0], sizes = [16, 256], strides = [1, 1]} : vector<16x1157xbf16> to vector<16x256xbf16>
    %c0_1 = arith.constant 0 : index
    %c0_2 = arith.constant 0 : index
    %3 = vector.load %arg2[%c0_1, %c0_2] : memref<256x128xbf16, #tpu.memory_space<vmem>>, vector<256x128xbf16>
    %cst = arith.constant dense<0.000000e+00> : vector<16x128xf32>
    %4 = tpu.matmul %2, %3, %cst {dimension_numbers = #tpu.dot_dimension_numbers<[1], [0], [0], [1], [0, 0, 1, 1], [], []>} : vector<16x256xbf16>, vector<256x128xbf16>, vector<16x128xf32> -> vector<16x128xf32>
    %c0_3 = arith.constant 0 : index
    %c0_4 = arith.constant 0 : index
    %5 = vector.load %arg3[%c0_3, %c0_4] : memref<1x128xf32, #tpu.memory_space<vmem>>, vector<1x128xf32>
    %6 = vector.broadcast %5 : vector<1x128xf32> to vector<16x128xf32>
    %7 = arith.addf %4, %6 : vector<16x128xf32>
    %cst_5 = arith.constant 0.000000e+00 : f32
    %8 = vector.broadcast %cst_5 : f32 to vector<16x128xf32>
    %9 = arith.maximumf %7, %8 : vector<16x128xf32>
    %c0_6 = arith.constant 0 : index
    %c0_7 = arith.constant 0 : index
    %10 = vector.load %arg4[%c0_6, %c0_7] : memref<1157x32xbf16, #tpu.memory_space<vmem>>, vector<1157x32xbf16>
    %cst_8 = arith.constant dense<0.000000e+00> : vector<16x32xf32>
    %11 = tpu.matmul %1, %10, %cst_8 {dimension_numbers = #tpu.dot_dimension_numbers<[1], [0], [0], [1], [0, 0, 1, 1], [], []>} : vector<16x1157xbf16>, vector<1157x32xbf16>, vector<16x32xf32> -> vector<16x32xf32>
    %c0_9 = arith.constant 0 : index
    %c0_10 = arith.constant 0 : index
    %12 = vector.load %arg5[%c0_9, %c0_10] : memref<1x32xf32, #tpu.memory_space<vmem>>, vector<1x32xf32>
    %13 = vector.broadcast %12 : vector<1x32xf32> to vector<16x32xf32>
    %14 = arith.addf %11, %13 : vector<16x32xf32>
    %cst_11 = arith.constant 0.000000e+00 : f32
    %15 = vector.broadcast %cst_11 : f32 to vector<16x32xf32>
    %16 = arith.maximumf %14, %15 : vector<16x32xf32>
    %17 = arith.truncf %9 : vector<16x128xf32> to vector<16x128xbf16>
    %c0_12 = arith.constant 0 : index
    %c0_13 = arith.constant 0 : index
    %18 = vector.load %arg6[%c0_12, %c0_13] : memref<128x512xbf16, #tpu.memory_space<vmem>>, vector<128x512xbf16>
    %cst_14 = arith.constant dense<0.000000e+00> : vector<16x512xf32>
    %19 = tpu.matmul %17, %18, %cst_14 {dimension_numbers = #tpu.dot_dimension_numbers<[1], [0], [0], [1], [0, 0, 1, 1], [], []>} : vector<16x128xbf16>, vector<128x512xbf16>, vector<16x512xf32> -> vector<16x512xf32>
    %20 = arith.truncf %16 : vector<16x32xf32> to vector<16x32xbf16>
    %c0_15 = arith.constant 0 : index
    %c0_16 = arith.constant 0 : index
    %21 = vector.load %arg7[%c0_15, %c0_16] : memref<32x512xbf16, #tpu.memory_space<vmem>>, vector<32x512xbf16>
    %cst_17 = arith.constant dense<0.000000e+00> : vector<16x512xf32>
    %22 = tpu.matmul %20, %21, %cst_17 {dimension_numbers = #tpu.dot_dimension_numbers<[1], [0], [0], [1], [0, 0, 1, 1], [], []>} : vector<16x32xbf16>, vector<32x512xbf16>, vector<16x512xf32> -> vector<16x512xf32>
    %23 = arith.addf %19, %22 : vector<16x512xf32>
    %c0_18 = arith.constant 0 : index
    %c0_19 = arith.constant 0 : index
    %24 = vector.load %arg8[%c0_18, %c0_19] : memref<1x512xf32, #tpu.memory_space<vmem>>, vector<1x512xf32>
    %25 = vector.broadcast %24 : vector<1x512xf32> to vector<16x512xf32>
    %26 = arith.addf %23, %25 : vector<16x512xf32>
    %cst_20 = arith.constant 0.000000e+00 : f32
    %27 = vector.broadcast %cst_20 : f32 to vector<16x512xf32>
    %28 = arith.maximumf %26, %27 : vector<16x512xf32>
    %29 = arith.truncf %28 : vector<16x512xf32> to vector<16x512xbf16>
    %c0_21 = arith.constant 0 : index
    %c0_22 = arith.constant 0 : index
    %30 = vector.load %arg9[%c0_21, %c0_22] : memref<512x512xbf16, #tpu.memory_space<vmem>>, vector<512x512xbf16>
    %cst_23 = arith.constant dense<0.000000e+00> : vector<16x512xf32>
    %31 = tpu.matmul %29, %30, %cst_23 {dimension_numbers = #tpu.dot_dimension_numbers<[1], [0], [0], [1], [0, 0, 1, 1], [], []>} : vector<16x512xbf16>, vector<512x512xbf16>, vector<16x512xf32> -> vector<16x512xf32>
    %c0_24 = arith.constant 0 : index
    %c0_25 = arith.constant 0 : index
    %32 = vector.load %arg10[%c0_24, %c0_25] : memref<1x512xf32, #tpu.memory_space<vmem>>, vector<1x512xf32>
    %33 = vector.broadcast %32 : vector<1x512xf32> to vector<16x512xf32>
    %34 = arith.addf %31, %33 : vector<16x512xf32>
    %cst_26 = arith.constant 0.000000e+00 : f32
    %35 = vector.broadcast %cst_26 : f32 to vector<16x512xf32>
    %36 = arith.maximumf %34, %35 : vector<16x512xf32>
    %37 = arith.truncf %36 : vector<16x512xf32> to vector<16x512xbf16>
    %c0_27 = arith.constant 0 : index
    %c0_28 = arith.constant 0 : index
    %38 = vector.load %arg11[%c0_27, %c0_28] : memref<512x256xbf16, #tpu.memory_space<vmem>>, vector<512x256xbf16>
    %cst_29 = arith.constant dense<0.000000e+00> : vector<16x256xf32>
    %39 = tpu.matmul %37, %38, %cst_29 {dimension_numbers = #tpu.dot_dimension_numbers<[1], [0], [0], [1], [0, 0, 1, 1], [], []>} : vector<16x512xbf16>, vector<512x256xbf16>, vector<16x256xf32> -> vector<16x256xf32>
    %c0_30 = arith.constant 0 : index
    %c0_31 = arith.constant 0 : index
    %40 = vector.load %arg12[%c0_30, %c0_31] : memref<1x256xf32, #tpu.memory_space<vmem>>, vector<1x256xf32>
    %41 = vector.broadcast %40 : vector<1x256xf32> to vector<16x256xf32>
    %42 = arith.addf %39, %41 : vector<16x256xf32>
    %cst_32 = arith.constant 0.000000e+00 : f32
    %43 = vector.broadcast %cst_32 : f32 to vector<16x256xf32>
    %44 = arith.maximumf %42, %43 : vector<16x256xf32>
    %45 = arith.truncf %44 : vector<16x256xf32> to vector<16x256xbf16>
    %c0_33 = arith.constant 0 : index
    %c0_34 = arith.constant 0 : index
    %46 = vector.load %arg13[%c0_33, %c0_34] : memref<256x128xbf16, #tpu.memory_space<vmem>>, vector<256x128xbf16>
    %cst_35 = arith.constant dense<0.000000e+00> : vector<16x128xf32>
    %47 = tpu.matmul %45, %46, %cst_35 {dimension_numbers = #tpu.dot_dimension_numbers<[1], [0], [0], [1], [0, 0, 1, 1], [], []>} : vector<16x256xbf16>, vector<256x128xbf16>, vector<16x128xf32> -> vector<16x128xf32>
    %c0_36 = arith.constant 0 : index
    %c0_37 = arith.constant 0 : index
    %48 = vector.load %arg14[%c0_36, %c0_37] : memref<1x128xf32, #tpu.memory_space<vmem>>, vector<1x128xf32>
    %49 = vector.broadcast %48 : vector<1x128xf32> to vector<16x128xf32>
    %50 = arith.addf %47, %49 : vector<16x128xf32>
    %51 = arith.truncf %50 : vector<16x128xf32> to vector<16x128xbf16>
    %c0_38 = arith.constant 0 : index
    %c0_39 = arith.constant 0 : index
    %52 = vector.load %arg15[%c0_38, %c0_39] : memref<16x128xbf16, #tpu.memory_space<vmem>>, vector<16x128xbf16>
    tpu.vector_store %arg15[%c0_38, %c0_39], %51 {strides = array<i32>} : memref<16x128xbf16, #tpu.memory_space<vmem>>, vector<16x128xbf16>,
    return
  }
  func.func @transform_0(%arg0: i32) -> (i32, i32) {
    %c0_i32 = arith.constant 0 : i32
    %c0_i32_0 = arith.constant 0 : i32
    return %arg0, %c0_i32 : i32, i32
  }
  func.func @transform_1(%arg0: i32) -> (i32, i32) {
    %c0_i32 = arith.constant 0 : i32
    %c0_i32_0 = arith.constant 0 : i32
    %c0_i32_1 = arith.constant 0 : i32
    return %c0_i32, %c0_i32_0 : i32, i32
  }
  func.func @transform_2(%arg0: i32) -> (i32, i32) {
    %c0_i32 = arith.constant 0 : i32
    %c0_i32_0 = arith.constant 0 : i32
    %c0_i32_1 = arith.constant 0 : i32
    return %c0_i32, %c0_i32_0 : i32, i32
  }
  func.func @transform_3(%arg0: i32) -> (i32, i32) {
    %c0_i32 = arith.constant 0 : i32
    %c0_i32_0 = arith.constant 0 : i32
    %c0_i32_1 = arith.constant 0 : i32
    return %c0_i32, %c0_i32_0 : i32, i32
  }
  func.func @transform_4(%arg0: i32) -> (i32, i32) {
    %c0_i32 = arith.constant 0 : i32
    %c0_i32_0 = arith.constant 0 : i32
    %c0_i32_1 = arith.constant 0 : i32
    return %c0_i32, %c0_i32_0 : i32, i32
  }
  func.func @transform_5(%arg0: i32) -> (i32, i32) {
    %c0_i32 = arith.constant 0 : i32
    %c0_i32_0 = arith.constant 0 : i32
    %c0_i32_1 = arith.constant 0 : i32
    return %c0_i32, %c0_i32_0 : i32, i32
  }
  func.func @transform_6(%arg0: i32) -> (i32, i32) {
    %c0_i32 = arith.constant 0 : i32
    %c0_i32_0 = arith.constant 0 : i32
    %c0_i32_1 = arith.constant 0 : i32
    return %c0_i32, %c0_i32_0 : i32, i32
  }
  func.func @transform_7(%arg0: i32) -> (i32, i32) {
    %c0_i32 = arith.constant 0 : i32
    %c0_i32_0 = arith.constant 0 : i32
    %c0_i32_1 = arith.constant 0 : i32
    return %c0_i32, %c0_i32_0 : i32, i32
  }
  func.func @transform_8(%arg0: i32) -> (i32, i32) {
    %c0_i32 = arith.constant 0 : i32
    %c0_i32_0 = arith.constant 0 : i32
    %c0_i32_1 = arith.constant 0 : i32
    return %c0_i32, %c0_i32_0 : i32, i32
  }
  func.func @transform_9(%arg0: i32) -> (i32, i32) {
    %c0_i32 = arith.constant 0 : i32
    %c0_i32_0 = arith.constant 0 : i32
    %c0_i32_1 = arith.constant 0 : i32
    return %c0_i32, %c0_i32_0 : i32, i32
  }
  func.func @transform_10(%arg0: i32) -> (i32, i32) {
    %c0_i32 = arith.constant 0 : i32
    %c0_i32_0 = arith.constant 0 : i32
    %c0_i32_1 = arith.constant 0 : i32
    return %c0_i32, %c0_i32_0 : i32, i32
  }
  func.func @transform_11(%arg0: i32) -> (i32, i32) {
    %c0_i32 = arith.constant 0 : i32
    %c0_i32_0 = arith.constant 0 : i32
    %c0_i32_1 = arith.constant 0 : i32
    return %c0_i32, %c0_i32_0 : i32, i32
  }
  func.func @transform_12(%arg0: i32) -> (i32, i32) {
    %c0_i32 = arith.constant 0 : i32
    %c0_i32_0 = arith.constant 0 : i32
    %c0_i32_1 = arith.constant 0 : i32
    return %c0_i32, %c0_i32_0 : i32, i32
  }
  func.func @transform_13(%arg0: i32) -> (i32, i32) {
    %c0_i32 = arith.constant 0 : i32
    %c0_i32_0 = arith.constant 0 : i32
    %c0_i32_1 = arith.constant 0 : i32
    return %c0_i32, %c0_i32_0 : i32, i32
  }
  func.func @transform_14(%arg0: i32) -> (i32, i32) {
    %c0_i32 = arith.constant 0 : i32
    %c0_i32_0 = arith.constant 0 : i32
    return %arg0, %c0_i32 : i32, i32
  }
}

</mosaic_0001>

<bundles_post_ra>
// kernel: tpu_custom_call.1
= control target key start
LH: loop header
LB: loop body
LE: loop exit
PB: predicated region body
PF: predicated region fallthrough
CT: control target
= control target key end

     0   :  { %19 = vsyncpa [#allocation3], 0  ;;  %s5243_s0 = inlined_call_operand.hbm [shape: f32[16,1157], index: 0, kind: input, shape index: {}]   ;;  %s5244_s1 = inlined_call_operand.hbm [shape: bf16[256,128], index: 1, kind: input, shape index: {}]   ;;  %s5245_s2 = inlined_call_operand.vmem [shape: f32[1,128], index: 2, kind: input, shape index: {}]   ;;  %s5246_s3 = inlined_call_operand.vmem [shape: bf16[1157,32], index: 3, kind: input, shape index: {}]   ;;  %s5247_s4 = inlined_call_operand.hbm [shape: f32[1,32], index: 4, kind: input, shape index: {}]   ;;  %s5248_s5 = inlined_call_operand.vmem [shape: bf16[128,512], index: 5, kind: input, shape index: {}]   ;;  %s5249_s6 = inlined_call_operand.hbm [shape: bf16[32,512], index: 6, kind: input, shape index: {}]   ;;  %s5250_s7 = inlined_call_operand.vmem [shape: f32[1,512], index: 7, kind: input, shape index: {}]   ;;  %s5251_s8 = inlined_call_operand.hbm [shape: bf16[512,512], index: 8, kind: input, shape index: {}]   ;;  %s5252_s9 = inlined_call_operand.vmem [shape: f32[1,512], index: 9, kind: input, shape index: {}]   ;;  %s5253_s10 = inlined_call_operand.vmem [shape: bf16[512,256], index: 10, kind: input, shape index: {}]   ;;  %s5254_s11 = inlined_call_operand.hbm [shape: f32[1,256], index: 11, kind: input, shape index: {}]   ;;  %s5255_s12 = inlined_call_operand.hbm [shape: bf16[256,128], index: 12, kind: input, shape index: {}]   ;;  %s5256_s13 = inlined_call_operand.vmem [shape: f32[1,128], index: 13, kind: input, shape index: {}]   ;;  %s5257_s14 = inlined_call_operand.hbm [shape: bf16[16,128], index: 14, kind: output, shape index: {}]  }
   0x1   :  { %20 = vsyncpa [#allocation6], 0 }
   0x2   :  { %21 = vsyncpa [#allocation9], 0 }
   0x3   :  { %22 = vsyncpa [#allocation12], 0 }
   0x4   :  { %23 = vsyncpa [#allocation4], 0  ;;  %s4452_s29 = smov [#allocation5]   ;;  %s4266_s17 = scalar_lea.hbm %s5244_s1, 2048 }
   0x5   :  { %s41_s30 = sshll.u32 %s4452_s29, 4  ;;  %p4267_p0 = scmp.ne.s32.totalorder %s5244_s1, %s4266_s17  ;;  %s42_s30 = int_to_ptr.vmem [resolvable:$true] %s41_s30 }
   0x6   :  { %p4270_p1 = scmp.lt.u32.totalorder %s4266_s17, %s5244_s1 }
   0x8   :  { %p4272_p2 = pnand %p4270_p1, %p4267_p0 }
   0xa   :  { %4275 = shalt.err (!%p4272_p2)
}
   0xb   :  { %s4276_s22 = scalar_lea.vmem %s42_s30, 2048  ;;  %p4281_p4 = scmp.lt.s32.totalorder %s42_s30, %s42_s30 }
   0xc   :  { %p4277_p3 = scmp.ne.s32.totalorder %s42_s30, %s4276_s22  ;;  %p4282_p5 = scmp.lt.s32.totalorder %s4276_s22, %s4276_s22 }
   0xe   :  { %p4283_p6 = por %p4282_p5, %p4281_p4 }
  0x10   :  { %p4284_p7 = pnand %p4283_p6, %p4277_p3 }
  0x12   :  { %4287 = shalt.err (!%p4284_p7)
}
  0x13   :  { %s5258_s23 = smov 64   ;;  %s4454_s24 = smov 4  }
  0x14   :  { %47 = dma.hbm_to_vmem [thread:$0]  %s5244_s1, 2048, %s42_s30, [#allocation6], %s5258_s23, %s5258_s23, %s4454_s24  }
  0x15   :  { %s4455_s27 = smov [#allocation8]   ;;  %s4288_s16 = scalar_lea.hbm %s5249_s6, 1024 }
  0x16   :  { %s69_s28 = sshll.u32 %s4455_s27, 4  ;;  %p4289_p8 = scmp.ne.s32.totalorder %s5249_s6, %s4288_s16  ;;  %s70_s28 = int_to_ptr.vmem [resolvable:$true] %s69_s28 }
  0x17   :  { %p4292_p9 = scmp.lt.u32.totalorder %s4288_s16, %s5249_s6 }
  0x19   :  { %p4294_p10 = pnand %p4292_p9, %p4289_p8 }
  0x1b   :  { %4297 = shalt.err (!%p4294_p10)
}
  0x1c   :  { %s4298_s21 = scalar_lea.vmem %s70_s28, 1024  ;;  %p4303_p12 = scmp.lt.s32.totalorder %s70_s28, %s70_s28 }
  0x1d   :  { %p4299_p11 = scmp.ne.s32.totalorder %s70_s28, %s4298_s21  ;;  %p4304_p13 = scmp.lt.s32.totalorder %s4298_s21, %s4298_s21 }
  0x1f   :  { %p4305_p0 = por %p4304_p13, %p4303_p12 }
  0x21   :  { %p4306_p1 = pnand %p4305_p0, %p4299_p11 }
  0x23   :  { %4309 = shalt.err (!%p4306_p1)
}
  0x24   :  { %s4456_s1 = smov 256   ;;  %s4457_s30 = smov 16  }
  0x25   :  { %75 = dma.hbm_to_vmem [thread:$0]  %s5249_s6, 1024, %s70_s28, [#allocation9], %s4456_s1, %s4456_s1, %s4457_s30  }
  0x26   :  { %s4458_s26 = smov [#allocation11]   ;;  %s4459_s29 = smov [#allocation2]  }
  0x27   :  { %s100_s27 = sshll.u32 %s4458_s26, 4  ;;  %s29_s15 = sshll.u32 %s4459_s29, 4  ;;  %s101_s27 = int_to_ptr.vmem [resolvable:$true] %s100_s27  ;;  %s4573_s15 = int_to_ptr.vmem [resolvable:$true] %s29_s15 }
  0x28   :  { %s4310_s18 = scalar_lea.hbm %s5254_s11, 32 }
  0x29   :  { %p4311_p2 = scmp.ne.s32.totalorder %s5254_s11, %s4310_s18  ;;  %p4314_p3 = scmp.lt.u32.totalorder %s4310_s18, %s5254_s11 }
  0x2b   :  { %p4316_p4 = pnand %p4314_p3, %p4311_p2 }
  0x2d   :  { %4319 = shalt.err (!%p4316_p4)
}
  0x2e   :  { %s4320_s6 = scalar_lea.vmem %s101_s27, 32  ;;  %p4325_p6 = scmp.lt.s32.totalorder %s101_s27, %s101_s27 }
  0x2f   :  { %p4321_p5 = scmp.ne.s32.totalorder %s101_s27, %s4320_s6  ;;  %p4326_p7 = scmp.lt.s32.totalorder %s4320_s6, %s4320_s6 }
  0x31   :  { %p4327_p8 = por %p4326_p7, %p4325_p6 }
  0x33   :  { %p4328_p9 = pnand %p4327_p8, %p4321_p5 }
  0x35   :  { %4331 = shalt.err (!%p4328_p9)
}
  0x36   :  { %103 = dma.hbm_to_vmem [thread:$0]  %s5254_s11, 32, %s101_s27, [#allocation12]  }
  0x37   :  { %s4332_s29 = scalar_lea.hbm %s5243_s0, 2560 }
  0x38   :  { %p4333_p10 = scmp.ne.s32.totalorder %s5243_s0, %s4332_s29  ;;  %p4336_p11 = scmp.lt.u32.totalorder %s4332_s29, %s5243_s0 }
  0x3a   :  { %p4338_p12 = pnand %p4336_p11, %p4333_p10 }
  0x3c   :  { %4341 = shalt.err (!%p4338_p12)
}
  0x3d   :  { %s4342_s19 = scalar_lea.vmem %s4573_s15, 2560  ;;  %p4347_p0 = scmp.lt.s32.totalorder %s4573_s15, %s4573_s15 }
  0x3e   :  { %p4343_p13 = scmp.ne.s32.totalorder %s4573_s15, %s4342_s19  ;;  %p4348_p1 = scmp.lt.s32.totalorder %s4342_s19, %s4342_s19 }
  0x40   :  { %p4349_p2 = por %p4348_p1, %p4347_p0 }
  0x42   :  { %p4350_p3 = pnand %p4349_p2, %p4343_p13 }
  0x44   :  { %4353 = shalt.err (!%p4350_p3)
}
  0x45   :  { %s4460_s11 = smov 1280   ;;  %s4461_s27 = smov 80  }
  0x46   :  { %35 = dma.hbm_to_vmem [thread:$0]  %s5243_s0, 2560, %s4573_s15, [#allocation3], %s4460_s11, %s4460_s11, %s4461_s27  }
  0x47   :  { %s4462_s6 = smov [#allocation7]   ;;  %s4463_s22 = smov [#allocation10]  }
  0x48   :  { %s58_s28 = sshll.u32 %s4462_s6, 4  ;;  %s83_s25 = sshll.u32 %s4463_s22, 4  ;;  %s59_s28 = int_to_ptr.vmem [resolvable:$true] %s58_s28  ;;  %s4604_s25 = int_to_ptr.vmem [resolvable:$true] %s83_s25 }
  0x49   :  { %s4354_s16 = scalar_lea.hbm %s5247_s4, 16 }
  0x4a   :  { %p4355_p4 = scmp.ne.s32.totalorder %s5247_s4, %s4354_s16  ;;  %p4358_p5 = scmp.lt.u32.totalorder %s4354_s16, %s5247_s4 }
  0x4c   :  { %p4360_p6 = pnand %p4358_p5, %p4355_p4 }
  0x4e   :  { %4363 = shalt.err (!%p4360_p6)
}
  0x4f   :  { %s4364_s0 = scalar_lea.vmem %s59_s28, 16  ;;  %s4368_s15 = scalar_lea.vmem %s59_s28, 32 }
  0x50   :  { %p4365_p7 = scmp.ne.s32.totalorder %s59_s28, %s4364_s0  ;;  %p4369_p8 = scmp.lt.s32.totalorder %s59_s28, %s59_s28 }
  0x51   :  { %p4370_p9 = scmp.lt.s32.totalorder %s4368_s15, %s4364_s0 }
  0x53   :  { %p4371_p10 = por %p4370_p9, %p4369_p8 }
  0x55   :  { %p4372_p11 = pnand %p4371_p10, %p4365_p7 }
  0x57   :  { %4375 = shalt.err (!%p4372_p11)
}
  0x58   :  { %61 = dma.hbm_to_vmem [thread:$0]  %s5247_s4, 16, %s59_s28, [#allocation6]  }
  0x59   :  { %s4376_s6 = scalar_lea.hbm %s5251_s8, 16384 }
  0x5a   :  { %p4377_p12 = scmp.ne.s32.totalorder %s5251_s8, %s4376_s6  ;;  %p4380_p13 = scmp.lt.u32.totalorder %s4376_s6, %s5251_s8 }
  0x5c   :  { %p4382_p0 = pnand %p4380_p13, %p4377_p12 }
  0x5e   :  { %4385 = shalt.err (!%p4382_p0)
}
  0x5f   :  { %s4386_s23 = scalar_lea.vmem %s4604_s25, 16384  ;;  %p4391_p2 = scmp.lt.s32.totalorder %s4604_s25, %s4604_s25 }
  0x60   :  { %p4387_p1 = scmp.ne.s32.totalorder %s4604_s25, %s4386_s23  ;;  %p4392_p3 = scmp.lt.s32.totalorder %s4386_s23, %s4386_s23 }
  0x62   :  { %p4393_p4 = por %p4392_p3, %p4391_p2 }
  0x64   :  { %p4394_p5 = pnand %p4393_p4, %p4387_p1 }
  0x66   :  { %4397 = shalt.err (!%p4394_p5)
}
  0x67   :  { %89 = dma.hbm_to_vmem [thread:$0]  %s5251_s8, 16384, %s4604_s25, [#allocation9], %s4456_s1, %s4456_s1, %s4457_s30  }
  0x68   :  { %s4464_s17 = smov [#allocation13]   ;;  %s4398_s15 = scalar_lea.hbm %s5255_s12, 2048 }
  0x69   :  { %s109_s18 = sshll.u32 %s4464_s17, 4  ;;  %p4399_p6 = scmp.ne.s32.totalorder %s5255_s12, %s4398_s15  ;;  %s110_s18 = int_to_ptr.vmem [resolvable:$true] %s109_s18 }
  0x6a   :  { %p4402_p7 = scmp.lt.u32.totalorder %s4398_s15, %s5255_s12 }
  0x6c   :  { %p4404_p8 = pnand %p4402_p7, %p4399_p6 }
  0x6e   :  { %4407 = shalt.err (!%p4404_p8)
}
  0x6f   :  { %s4408_s6 = scalar_lea.vmem %s110_s18, 2048  ;;  %p4413_p10 = scmp.lt.s32.totalorder %s110_s18, %s110_s18 }
  0x70   :  { %p4409_p9 = scmp.ne.s32.totalorder %s110_s18, %s4408_s6  ;;  %p4414_p11 = scmp.lt.s32.totalorder %s4408_s6, %s4408_s6 }
  0x72   :  { %p4415_p12 = por %p4414_p11, %p4413_p10 }
  0x74   :  { %p4416_p13 = pnand %p4415_p12, %p4409_p9 }
  0x76   :  { %4419 = shalt.err (!%p4416_p13)
}
  0x77   :  { %s5260_s8 = smov 64  }
  0x78   :  { %115 = dma.hbm_to_vmem [thread:$0]  %s5255_s12, 2048, %s110_s18, [#allocation12], %s5260_s8, %s5260_s8, %s4454_s24  }
  0x79   :  { %4442 = dma.done.wait [#allocation3], 2560  }
  0x7a   :  { %4443 = vsyncadd [#allocation3], 4294964736 }
  0x7b   :  { %4444 = dma.done.wait [#allocation6], 2064  }
  0x7c   :  { %4445 = vsyncadd [#allocation6], 4294965232 }
  0x7d   :  { %4446 = dma.done.wait [#allocation9], 17408  }
  0x7e   :  { %4447 = vsyncadd [#allocation9], 4294949888 }
  0x7f   :  { %4448 = dma.done.wait [#allocation12], 2080  }
  0x80   :  { %4449 = vsyncadd [#allocation12], 4294965216  ;;  %v3813_v0 = vld [vmem:[#allocation5 + $0x40] sm:$0xff]   ;;  %v3815_v2 = vld [vmem:[#allocation5 + $0x48] sm:$0xff]   ;;  %vm935_vm0 = vcmask 39936   ;;  %vm939_vm1 = vcmask 1041408  }
  0x81   :  { %v3814_v1 = vld [vmem:[#allocation5] sm:$0xff]   ;;  %3633 = vmatprep.subr.bf16.mxu1 %v3813_v0  ;;  %v3816_v3 = vld [vmem:[#allocation5 + $0x8] sm:$0xff]   ;;  %v3817_v4 = vld [vmem:[#allocation5 + $0x50] sm:$0xff]   ;;  %vm940_vm2 = vcmask 1042432   ;;  %vm1235_vm3 = vcmask 261120   ;;  %s4467_s25 = smov [#allocation14]  }
  0x82   :  { %3634 = vmatpush3.bf16.msra.mxu1 %v3814_v1  ;;  %v3818_v5 = vld [vmem:[#allocation5 + $0x10] sm:$0xff]   ;;  %v3819_v6 = vld [vmem:[#allocation5 + $0x58] sm:$0xff]   ;;  %v3821_v8 = vld [vmem:[#allocation5 + $0x60] sm:$0xff]   ;;  %s3266_s22 = sshll.u32 %s4467_s25, 4  ;;  %s3267_s22 = int_to_ptr.vmem [resolvable:$true] %s3266_s22 }
  0x83   :  { %3635 = vmatprep.subr.bf16.mxu1 %v3815_v2  ;;  %v3820_v7 = vld [vmem:[#allocation5 + $0x18] sm:$0xff]   ;;  %v3822_v9 = vld [vmem:[#allocation5 + $0x20] sm:$0xff]   ;;  %v3823_v10 = vld [vmem:[#allocation5 + $0x68] sm:$0xff]   ;;  %s4420_s26 = scalar_lea.vmem %s3267_s22, 128  ;;  %p4425_p1 = scmp.lt.s32.totalorder %s3267_s22, %s3267_s22 }
  0x84   :  { %v141_v11 = vld [vmem:[#allocation2 + $0x8] sm:$0xff]  ;;  %v151_v12 = vld [vmem:[#allocation2 + $0x58] sm:$0xff]  ;;  %v3825_v15 = vld [vmem:[#allocation5 + $0x70] sm:$0xff]   ;;  %p4421_p0 = scmp.ne.s32.totalorder %s3267_s22, %s4420_s26  ;;  %p4426_p2 = scmp.lt.s32.totalorder %s4420_s26, %s4420_s26 }
  0x85   :  { %v161_v13 = vpack.c.bf16 %v151_v12, %v141_v11  ;;  %v3824_v14 = vld [vmem:[#allocation5 + $0x28] sm:$0xff]   ;;  %v3831_v16 = vld [vmem:[%s5246_s3 + $0xc0] sm:$0xff]   ;;  %v3826_v18 = vld [vmem:[#allocation5 + $0x30] sm:$0xff]  }
  0x86   :  { %3636 = vmatpush3.bf16.msra.mxu1 %v3816_v3  ;;  %v3832_v17 = vld [vmem:[%s5246_s3 + $0x80] sm:$0xff]   ;;  %3677 = vmatprep.subr.bf16.mxu0 %v3831_v16  ;;  %v3827_v19 = vld [vmem:[#allocation5 + $0x78] sm:$0xff]   ;;  %v3835_v20 = vld [vmem:[%s5246_s3 + $0xc8] sm:$0xff]   ;;  %p4427_p3 = por %p4426_p2, %p4425_p1 }
  0x87   :  { %3637 = vmatprep.subr.bf16.mxu1 %v3817_v4  ;;  %337 = vmatprep.mubr.bf16.mxu1 %v161_v13  ;;  %v3828_v21 = vld [vmem:[#allocation5 + $0x38] sm:$0xff]   ;;  %v140_v22 = vld [vmem:[#allocation2] sm:$0xff]  ;;  %v3836_v23 = vld [vmem:[%s5246_s3 + $0x88] sm:$0xff]  }
  0x88   :  { %3678 = vmatpush3.bf16.msra.mxu0 %v3832_v17  ;;  %v150_v24 = vld [vmem:[#allocation2 + $0x50] sm:$0xff]  ;;  %v3829_v25 = vld [vmem:[%s5246_s3 + $0x40] sm:$0xff]   ;;  %v3833_v30 = vld [vmem:[%s5246_s3 + $0x48] sm:$0xff]   ;;  %p4428_p4 = pnand %p4427_p3, %p4421_p0 }
  0x89   :  { %3679 = vmatprep.subr.bf16.mxu0 %v3835_v20  ;;  %v3839_v26 = vld [vmem:[%s5246_s3 + $0xd0] sm:$0xff]   ;;  %v4674_v28 = vpack.c.bf16 %v150_v24, %v140_v22  ;;  %v3830_v29 = vld [vmem:[%s5246_s3] sm:$0xff]   ;;  %v3843_v31 = vld [vmem:[%s5246_s3 + $0xd8] sm:$0xff]  }
  0x8a   :  { %3638 = vmatpush3.bf16.msra.mxu1 %v3818_v5  ;;  %v3840_v27 = vld [vmem:[%s5246_s3 + $0x90] sm:$0xff]   ;;  %v3844_v32 = vld [vmem:[%s5246_s3 + $0x98] sm:$0xff]   ;;  %v3834_v33 = vld [vmem:[%s5246_s3 + $0x8] sm:$0xff]  }
  0x8b   :  { %3639 = vmatprep.subr.bf16.mxu1 %v3819_v6  ;;  %v3837_v34 = vld [vmem:[%s5246_s3 + $0x50] sm:$0xff]   ;;  %v3847_v35 = vld [vmem:[%s5246_s3 + $0xe0] sm:$0xff]   ;;  %v3841_v38 = vld [vmem:[%s5246_s3 + $0x58] sm:$0xff]  }
  0x8c   :  { %3680 = vmatpush3.bf16.msra.mxu0 %v3836_v23  ;;  %v3848_v36 = vld [vmem:[%s5246_s3 + $0xa0] sm:$0xff]   ;;  %v3838_v37 = vld [vmem:[%s5246_s3 + $0x10] sm:$0xff]   ;;  %v3851_v39 = vld [vmem:[%s5246_s3 + $0xe8] sm:$0xff]  }
  0x8d   :  { %3681 = vmatprep.subr.bf16.mxu0 %v3839_v26  ;;  %v3852_v40 = vld [vmem:[%s5246_s3 + $0xa8] sm:$0xff]   ;;  %v3842_v41 = vld [vmem:[%s5246_s3 + $0x18] sm:$0xff]   ;;  %v3845_v42 = vld [vmem:[%s5246_s3 + $0x60] sm:$0xff]  }
  0x8e   :  { %3640 = vmatpush3.bf16.msra.mxu1 %v3820_v7  ;;  %v3855_v43 = vld [vmem:[%s5246_s3 + $0xf0] sm:$0xff]   ;;  %v3846_v45 = vld [vmem:[%s5246_s3 + $0x20] sm:$0xff]   ;;  %v3849_v46 = vld [vmem:[%s5246_s3 + $0x68] sm:$0xff]  }
  0x8f   :  { %3641 = vmatprep.subr.bf16.mxu1 %v3821_v8  ;;  %v3856_v44 = vld [vmem:[%s5246_s3 + $0xb0] sm:$0xff]   ;;  %v3859_v47 = vld [vmem:[%s5246_s3 + $0xf8] sm:$0xff]   ;;  %v3850_v49 = vld [vmem:[%s5246_s3 + $0x28] sm:$0xff]  }
  0x90   :  { %3682 = vmatpush3.bf16.msra.mxu0 %v3840_v27  ;;  %v3860_v48 = vld [vmem:[%s5246_s3 + $0xb8] sm:$0xff]   ;;  %v153_v51 = vld [vmem:[#allocation2 + $0x68] sm:$0xff]  ;;  %v3853_v52 = vld [vmem:[%s5246_s3 + $0x70] sm:$0xff]  }
  0x91   :  { %3683 = vmatprep.subr.bf16.mxu0 %v3843_v31  ;;  %v143_v50 = vld [vmem:[#allocation2 + $0x18] sm:$0xff]  ;;  %v142_v54 = vld [vmem:[#allocation2 + $0x10] sm:$0xff]  ;;  %v152_v55 = vld [vmem:[#allocation2 + $0x60] sm:$0xff] }
  0x92   :  { %3642 = vmatpush3.bf16.msra.mxu1 %v3822_v9  ;;  %v163_v53 = vpack.c.bf16 %v153_v51, %v143_v50  ;;  %v162_v56 = vpack.c.bf16 %v152_v55, %v142_v54  ;;  %v3863_v57 = vld [vmem:[%s5246_s3 + $0x1c0] sm:$0xff]   ;;  %v3854_v59 = vld [vmem:[%s5246_s3 + $0x30] sm:$0xff]   ;;  %v3857_v60 = vld [vmem:[%s5246_s3 + $0x78] sm:$0xff]  }
  0x93   :  { %3643 = vmatprep.subr.bf16.mxu1 %v3823_v10  ;;  %v3864_v58 = vld [vmem:[%s5246_s3 + $0x180] sm:$0xff]   ;;  %v3867_v61 = vld [vmem:[%s5246_s3 + $0x1c8] sm:$0xff]   ;;  %v3858_v63 = vld [vmem:[%s5246_s3 + $0x38] sm:$0xff]  }
  0x94   :  { %3684 = vmatpush3.bf16.msra.mxu0 %v3844_v32  ;;  %1019 = vmatprep.mubr.bf16.mxu0 %v163_v53  ;;  %v3868_v62 = vld [vmem:[%s5246_s3 + $0x188] sm:$0xff]   ;;  %v3861_v0 = vld [vmem:[%s5246_s3 + $0x140] sm:$0xff]   ;;  %v3871_v1 = vld [vmem:[%s5246_s3 + $0x1d0] sm:$0xff]  }
  0x95   :  { %3685 = vmatprep.subr.bf16.mxu0 %v3847_v35  ;;  %v3872_v2 = vld [vmem:[%s5246_s3 + $0x190] sm:$0xff]   ;;  %v3862_v3 = vld [vmem:[%s5246_s3 + $0x100] sm:$0xff]   ;;  %v3865_v4 = vld [vmem:[%s5246_s3 + $0x148] sm:$0xff]  }
  0x96   :  { %3644 = vmatpush3.bf16.msra.mxu1 %v3824_v14  ;;  %v3875_v5 = vld [vmem:[%s5246_s3 + $0x1d8] sm:$0xff]   ;;  %v3866_v7 = vld [vmem:[%s5246_s3 + $0x108] sm:$0xff]   ;;  %v3869_v8 = vld [vmem:[%s5246_s3 + $0x150] sm:$0xff]  }
  0x97   :  { %3645 = vmatprep.subr.bf16.mxu1 %v3825_v15  ;;  %v3876_v6 = vld [vmem:[%s5246_s3 + $0x198] sm:$0xff]   ;;  %v3879_v9 = vld [vmem:[%s5246_s3 + $0x1e0] sm:$0xff]   ;;  %v3870_v11 = vld [vmem:[%s5246_s3 + $0x110] sm:$0xff]  }
  0x98   :  { %3686 = vmatpush3.bf16.msra.mxu0 %v3848_v36  ;;  %v3880_v10 = vld [vmem:[%s5246_s3 + $0x1a0] sm:$0xff]   ;;  %v3873_v12 = vld [vmem:[%s5246_s3 + $0x158] sm:$0xff]   ;;  %v3884_v14 = vld [vmem:[%s5246_s3 + $0x1a8] sm:$0xff]  }
  0x99   :  { %3687 = vmatprep.subr.bf16.mxu0 %v3851_v39  ;;  %v3874_v15 = vld [vmem:[%s5246_s3 + $0x118] sm:$0xff]   ;;  %v3877_v16 = vld [vmem:[%s5246_s3 + $0x160] sm:$0xff]   ;;  %v3887_v17 = vld [vmem:[%s5246_s3 + $0x1f0] sm:$0xff]  }
  0x9a   :  { %3646 = vmatpush3.bf16.msra.mxu1 %v3826_v18  ;;  %v3888_v18 = vld [vmem:[%s5246_s3 + $0x1b0] sm:$0xff]   ;;  %v3881_v20 = vld [vmem:[%s5246_s3 + $0x168] sm:$0xff]   ;;  %v155_v23 = vld [vmem:[#allocation2 + $0x78] sm:$0xff] }
  0x9b   :  { %3647 = vmatprep.subr.bf16.mxu1 %v3827_v19  ;;  %v3878_v19 = vld [vmem:[%s5246_s3 + $0x120] sm:$0xff]   ;;  %v145_v22 = vld [vmem:[#allocation2 + $0x28] sm:$0xff]  ;;  %v3892_v27 = vld [vmem:[%s5246_s3 + $0x1b8] sm:$0xff]  }
  0x9c   :  { %3688 = vmatpush3.bf16.msra.mxu0 %v3852_v40  ;;  %v3882_v24 = vld [vmem:[%s5246_s3 + $0x128] sm:$0xff]   ;;  %v165_v26 = vpack.c.bf16 %v155_v23, %v145_v22  ;;  %v146_v31 = vld [vmem:[#allocation2 + $0x30] sm:$0xff]  ;;  %v156_v32 = vld [vmem:[#allocation2 + $0x80] sm:$0xff] }
  0x9d   :  { %3689 = vmatprep.subr.bf16.mxu0 %v3855_v43  ;;  %v3889_v35 = vld [vmem:[%s5246_s3 + $0x178] sm:$0xff]   ;;  %v154_v39 = vld [vmem:[#allocation2 + $0x70] sm:$0xff]  ;;  %v3893_v43 = vld [vmem:[%s5246_s3 + $0x200] sm:$0xff]  }
  0x9e   :  { %3648 = vmatpush3.bf16.msra.mxu1 %v3828_v21  ;;  %v3891_v21 = vld [vmem:[%s5246_s3 + $0x1f8] sm:$0xff]   ;;  %v3895_v50 = vld [vmem:[%s5246_s3 + $0x210] sm:$0xff]  }
  0x9f   :  { %3655 = vmatprep.subr.bf16.mxu1 %v3829_v25  ;;  %v3885_v25 = vld [vmem:[%s5246_s3 + $0x170] sm:$0xff]   ;;  %v3890_v36 = vld [vmem:[%s5246_s3 + $0x138] sm:$0xff]  }
  0xa0   :  { %3690 = vmatpush3.bf16.msra.mxu0 %v3856_v44  ;;  %v3910_v51 = vld [vmem:[%s5248_s5 + $0x44] ss:$16 sps:$4 sm:$0xff]   ;;  %v3896_v54 = vld [vmem:[%s5246_s3 + $0x218] sm:$0xff]   ;;  %v3911_v55 = vld [vmem:[%s5248_s5 + $0x60] ss:$16 sps:$4 sm:$0xff]  }
  0xa1   :  { %338 = vmatmul.mubr.bf16.vlgmr.msra.gmra.mrb[0].mxu1 %v4674_v28  ;;  %3691 = vmatprep.subr.bf16.mxu0 %v3859_v47  ;;  %v3907_v47 = vld [vmem:[%s5248_s5 + $0x24] ss:$16 sps:$4 sm:$0xff]  }
  0xa2   :  { %3656 = vmatpush3.bf16.msra.mxu1 %v3830_v29  ;;  %978 = vmatprep.mubr.bf16.mxu1 %v161_v13  ;;  %v3883_v13 = vld [vmem:[%s5246_s3 + $0x1e8] sm:$0xff]   ;;  %v3913_v53 = vld [vmem:[%s5248_s5 + $0x64] ss:$16 sps:$4 sm:$0xff]  }
  0xa3   :  { %3657 = vmatprep.subr.bf16.mxu1 %v3833_v30  ;;  %v157_v29 = vld [vmem:[#allocation2 + $0x88] sm:$0xff] }
  0xa4   :  { %3692 = vmatpush3.bf16.msra.mxu0 %v3860_v48  ;;  %v3894_v48 = vld [vmem:[%s5246_s3 + $0x208] sm:$0xff]  }
  0xa5   :  { %3721 = vmatprep.subr.bf16.mxu0 %v3863_v57  ;;  %v3897_v57 = vld [vmem:[%s5246_s3 + $0x220] sm:$0xff]  }
  0xa6   :  { %3658 = vmatpush3.bf16.msra.mxu1 %v3834_v33  ;;  %v3886_v33 = vld [vmem:[%s5246_s3 + $0x130] sm:$0xff]  }
  0xa7   :  { %3659 = vmatprep.subr.bf16.mxu1 %v3837_v34  ;;  %1020 = vmatmul.mubr.bf16.vlgmr.msra.gmra.mrb[0].mxu0 %v162_v56  ;;  %v166_v34 = vpack.c.bf16 %v156_v32, %v146_v31  ;;  %v3916_v56 = vld [vmem:[%s5248_s5 + $0x84] ss:$16 sps:$4 sm:$0xff]  }
  0xa8   :  { %3722 = vmatpush3.bf16.msra.mxu0 %v3864_v58  ;;  %v3914_v58 = vld [vmem:[%s5248_s5 + $0x80] ss:$16 sps:$4 sm:$0xff]  }
  0xa9   :  { %3723 = vmatprep.subr.bf16.mxu0 %v3867_v61  ;;  %v3917_v61 = vld [vmem:[%s5248_s5 + $0xa0] ss:$16 sps:$4 sm:$0xff]  }
  0xaa   :  { %3660 = vmatpush3.bf16.msra.mxu1 %v3838_v37  ;;  %v144_v37 = vld [vmem:[#allocation2 + $0x20] sm:$0xff] }
  0xab   :  { %3661 = vmatprep.subr.bf16.mxu1 %v3841_v38  ;;  %v4465_v38 = vmov 0   ;;  %v164_v40 = vpack.c.bf16 %v154_v39, %v144_v37 }
  0xac   :  { %3724 = vmatpush3.bf16.msra.mxu0 %v3868_v62  ;;  %v3899_v62 = vld [vmem:[%s5246_s3 + $0x230] sm:$0xff]  }
  0xad   :  { %3725 = vmatprep.subr.bf16.mxu0 %v3871_v1  ;;  %v3900_v1 = vld [vmem:[%s5246_s3 + $0x238] sm:$0xff]  }
  0xae   :  { %3662 = vmatpush3.bf16.msra.mxu1 %v3842_v41  ;;  %v149_v41 = vld [vmem:[#allocation2 + $0x48] sm:$0xff] }
  0xaf   :  { %3663 = vmatprep.subr.bf16.mxu1 %v3845_v42  ;;  %v159_v42 = vld [vmem:[#allocation2 + $0x98] sm:$0xff] }
  0xb0   :  { %3726 = vmatpush3.bf16.msra.mxu0 %v3872_v2  ;;  %v169_v44 = vpack.c.bf16 %v159_v42, %v149_v41  ;;  %v3901_v2 = vld [vmem:[%s5246_s3 + $0x240] ss:$0 sps:$4 sm:$0x77]  }
  0xb1   :  { %3727 = vmatprep.subr.bf16.mxu0 %v3875_v5  ;;  %v3925_v5 = vld [vmem:[%s5248_s5 + $0xe4] ss:$16 sps:$4 sm:$0xff]  }
  0xb2   :  { %3664 = vmatpush3.bf16.msra.mxu1 %v3846_v45  ;;  %v3902_v45 = vld [vmem:[%s5248_s5] ss:$16 sps:$4 sm:$0xff]  }
  0xb3   :  { %3665 = vmatprep.subr.bf16.mxu1 %v3849_v46  ;;  %v3904_v46 = vld [vmem:[%s5248_s5 + $0x4] ss:$16 sps:$4 sm:$0xff]  }
  0xb4   :  { %3728 = vmatpush3.bf16.msra.mxu0 %v3876_v6 }
  0xb5   :  { %3729 = vmatprep.subr.bf16.mxu0 %v3879_v9  ;;  %v158_v9 = vld [vmem:[#allocation2 + $0x90] sm:$0xff] }
  0xb6   :  { %3666 = vmatpush3.bf16.msra.mxu1 %v3850_v49  ;;  %v3905_v49 = vld [vmem:[%s5248_s5 + $0x20] ss:$16 sps:$4 sm:$0xff]  }
  0xb7   :  { %3667 = vmatprep.subr.bf16.mxu1 %v3853_v52  ;;  %v3908_v52 = vld [vmem:[%s5248_s5 + $0x40] ss:$16 sps:$4 sm:$0xff]  }
  0xb8   :  { %3730 = vmatpush3.bf16.msra.mxu0 %v3880_v10 }
  0xb9   :  { %3731 = vmatprep.subr.bf16.mxu0 %v3883_v13  ;;  %v3926_v13 = vld [vmem:[#allocation8] ss:$16 sps:$4 sm:$0xff]  }
  0xba   :  { %3668 = vmatpush3.bf16.msra.mxu1 %v3854_v59  ;;  %v3898_v59 = vld [vmem:[%s5246_s3 + $0x228] sm:$0xff]  }
  0xbb   :  { %3669 = vmatprep.subr.bf16.mxu1 %v3857_v60  ;;  %v3919_v60 = vld [vmem:[%s5248_s5 + $0xa4] ss:$16 sps:$4 sm:$0xff]  }
  0xbc   :  { %3732 = vmatpush3.bf16.msra.mxu0 %v3884_v14  ;;  %v3931_v14 = vld [vmem:[#allocation8 + $0x24] ss:$16 sps:$4 sm:$0xff]  }
  0xbd   :  { %3733 = vmatprep.subr.bf16.mxu0 %v3887_v17 }
  0xbe   :  { %3670 = vmatpush3.bf16.msra.mxu1 %v3858_v63  ;;  %v3922_v63 = vld [vmem:[%s5248_s5 + $0xc4] ss:$16 sps:$4 sm:$0xff]  }
  0xbf   :  { %3699 = vmatprep.subr.bf16.mxu1 %v3861_v0  ;;  %v3920_v0 = vld [vmem:[%s5248_s5 + $0xc0] ss:$16 sps:$4 sm:$0xff]  }
  0xc0   :  { %3734 = vmatpush3.bf16.msra.mxu0 %v3888_v18  ;;  %v3281_v18 = vld [vmem:[%s5245_s2] ss:$0 sm:$0xff] }
  0xc1   :  { %979 = vmatmul.mubr.bf16.vlgmr.msra.gmra.mrb[4].mxu1 %v4674_v28  ;;  %3735 = vmatprep.subr.bf16.mxu0 %v3891_v21  ;;  %v147_v28 = vld [vmem:[#allocation2 + $0x38] sm:$0xff] }
  0xc2   :  { %3700 = vmatpush3.bf16.msra.mxu1 %v3862_v3  ;;  %1060 = vmatprep.mubr.bf16.mxu1 %v165_v26  ;;  %v167_v30 = vpack.c.bf16 %v157_v29, %v147_v28  ;;  %v4466_v3 = vmov 65535  }
  0xc3   :  { %3701 = vmatprep.subr.bf16.mxu1 %v3865_v4  ;;  %v941_v4 = vsel %vm939_vm1, 4294967295, %v4466_v3 }
  0xc4   :  { %3736 = vmatpush3.bf16.msra.mxu0 %v3892_v27  ;;  %1101 = vmatprep.mubr.bf16.mxu0 %v167_v30  ;;  %v942_v6 = vsel %vm940_vm2, %v941_v4, 0 }
  0xc5   :  { %1485 = vmatprep.subr.bf16.mxu0 %v3904_v46  ;;  %v944_v10 = vand.u32 %v3901_v2, %v942_v6 }
  0xc6   :  { %3702 = vmatpush3.bf16.msra.mxu1 %v3866_v7  ;;  %v3923_v7 = vld [vmem:[%s5248_s5 + $0xe0] ss:$16 sps:$4 sm:$0xff]  }
  0xc7   :  { %3703 = vmatprep.subr.bf16.mxu1 %v3869_v8  ;;  %1102 = vmatmul.mubr.bf16.vlgmr.msra.gmra.mrb[4].mxu0 %v166_v34  ;;  %v148_v8 = vld [vmem:[#allocation2 + $0x40] sm:$0xff] }
  0xc8   :  { %1517 = vmatprep.mubr.bf16.mxu0 %v4465_v38  ;;  %1486 = vmatpush1.bf16.msra.mxu0 %v3902_v45 }
  0xc9   :  { %1487 = vmatprep.subr.bf16.mxu0 %v3907_v47 }
  0xca   :  { %3704 = vmatpush3.bf16.msra.mxu1 %v3870_v11  ;;  %v168_v11 = vpack.c.bf16 %v158_v9, %v148_v8 }
  0xcb   :  { %3705 = vmatprep.subr.bf16.mxu1 %v3873_v12  ;;  %v3928_v12 = vld [vmem:[#allocation8 + $0x4] ss:$16 sps:$4 sm:$0xff]  }
  0xcc   :  { %1488 = vmatpush1.bf16.msra.mxu0 %v3905_v49 }
  0xcd   :  { %1489 = vmatprep.subr.bf16.mxu0 %v3910_v51 }
  0xce   :  { %3706 = vmatpush3.bf16.msra.mxu1 %v3874_v15  ;;  %v3929_v15 = vld [vmem:[#allocation8 + $0x20] ss:$16 sps:$4 sm:$0xff]  }
  0xcf   :  { %3707 = vmatprep.subr.bf16.mxu1 %v3877_v16  ;;  %v3934_v16 = vld [vmem:[#allocation8 + $0xc] ss:$16 sps:$4 sm:$0xff]  }
  0xd0   :  { %1490 = vmatpush1.bf16.msra.mxu0 %v3908_v52 }
  0xd1   :  { %1491 = vmatprep.subr.bf16.mxu0 %v3913_v53 }
  0xd2   :  { %3708 = vmatpush3.bf16.msra.mxu1 %v3878_v19 }
  0xd3   :  { %3709 = vmatprep.subr.bf16.mxu1 %v3881_v20 }
  0xd4   :  { %1492 = vmatpush1.bf16.msra.mxu0 %v3911_v55 }
  0xd5   :  { %1493 = vmatprep.subr.bf16.mxu0 %v3916_v56 }
  0xd6   :  { %3710 = vmatpush3.bf16.msra.mxu1 %v3882_v24 }
  0xd7   :  { %3711 = vmatprep.subr.bf16.mxu1 %v3885_v25 }
  0xd8   :  { %1494 = vmatpush1.bf16.msra.mxu0 %v3914_v58 }
  0xd9   :  { %1495 = vmatprep.subr.bf16.mxu0 %v3919_v60 }
  0xda   :  { %3712 = vmatpush3.bf16.msra.mxu1 %v3886_v33 }
  0xdb   :  { %3713 = vmatprep.subr.bf16.mxu1 %v3889_v35 }
  0xdc   :  { %1496 = vmatpush1.bf16.msra.mxu0 %v3917_v61 }
  0xdd   :  { %1497 = vmatprep.subr.bf16.mxu0 %v3922_v63  ;;  %v3962_v63 = vld [vmem:[#allocation10] ss:$16 sps:$4 sm:$0xff]  }
  0xde   :  { %3714 = vmatpush3.bf16.msra.mxu1 %v3890_v36  ;;  %v3298_v36 = vld [vmem:[#allocation7] ss:$0 sm:$0xff] }
  0xdf   :  { %1110 = vmatprep.subr.bf16.mxu1 %v4465_v38 }
  0xe0   :  { %1498 = vmatpush1.bf16.msra.mxu0 %v3920_v0  ;;  %v3964_v0 = vld [vmem:[#allocation10 + $0x4] ss:$16 sps:$4 sm:$0xff]  }
  0xe1   :  { %1061 = vmatmul.mubr.bf16.vlgmr.msra.gmra.mrb[8].mxu1 %v164_v40  ;;  %1499 = vmatprep.subr.bf16.mxu0 %v3925_v5  ;;  %v3968_v5 = vld [vmem:[#allocation10 + $0x20] ss:$16 sps:$4 sm:$0xff]  }
  0xe2   :  { %1111 = vmatpush1.bf16.msra.mxu1 %v3893_v43  ;;  %3372 = vmatprep.mubr.msk.bf16.mxu1 %vm935_vm0, %v169_v44 }
  0xe3   :  { %1112 = vmatprep.subr.bf16.mxu1 %v4465_v38 }
  0xe4   :  { %1500 = vmatpush1.bf16.msra.mxu0 %v3923_v7  ;;  %v3976_v7 = vld [vmem:[#allocation10 + $0x44] ss:$16 sps:$4 sm:$0xff]  }
  0xe5   :  { %2403 = vmatprep.subr.bf16.mxu0 %v3964_v0  ;;  %v3997_v0 = vld [vmem:[#allocation10 + $0xac] ss:$16 sps:$4 sm:$0xff]  }
  0xe6   :  { %1113 = vmatpush1.bf16.msra.mxu1 %v3894_v48 }
  0xe7   :  { %1114 = vmatprep.subr.bf16.mxu1 %v4465_v38 }
  0xea   :  { %1115 = vmatpush1.bf16.msra.mxu1 %v3895_v50 }
  0xeb   :  { %1116 = vmatprep.subr.bf16.mxu1 %v4465_v38 }
  0xee   :  { %1117 = vmatpush1.bf16.msra.mxu1 %v3896_v54 }
  0xef   :  { %1118 = vmatprep.subr.bf16.mxu1 %v4465_v38 }
  0xf2   :  { %1119 = vmatpush1.bf16.msra.mxu1 %v3897_v57 }
  0xf3   :  { %1120 = vmatprep.subr.bf16.mxu1 %v4465_v38 }
  0xf6   :  { %1121 = vmatpush1.bf16.msra.mxu1 %v3898_v59 }
  0xf7   :  { %1122 = vmatprep.subr.bf16.mxu1 %v4465_v38 }
  0xfa   :  { %1123 = vmatpush1.bf16.msra.mxu1 %v3899_v62 }
  0xfb   :  { %1124 = vmatprep.subr.bf16.mxu1 %v4465_v38 }
  0xfe   :  { %1125 = vmatpush1.bf16.msra.mxu1 %v3900_v1  ;;  %v3970_v1 = vld [vmem:[#allocation10 + $0x24] ss:$16 sps:$4 sm:$0xff]  }
  0xff   :  { %1126 = vmatprep.subr.bf16.mxu1 %v4465_v38 }
 0x102   :  { %1127 = vmatpush1.bf16.msra.mxu1 %v944_v10 }
 0x103   :  { %1239 = vmatprep.subr.bf16.mxu1 %v3928_v12  ;;  %v3974_v12 = vld [vmem:[#allocation10 + $0x40] ss:$16 sps:$4 sm:$0xff]  }
 0x105   :  { %1143 = vmatmul.mubr.bf16.vlgmr.msra.gmra.mrb[12].mxu1 %v168_v11 }
 0x106   :  { %1271 = vmatprep.mubr.bf16.mxu1 %v4465_v38  ;;  %1240 = vmatpush1.bf16.msra.mxu1 %v3926_v13  ;;  %v3932_v13 = vld [vmem:[#allocation8 + $0x8] ss:$16 sps:$4 sm:$0xff]  }
 0x107   :  { %1241 = vmatprep.subr.bf16.mxu1 %v3931_v14 }
 0x10a   :  { %1242 = vmatpush1.bf16.msra.mxu1 %v3929_v15  ;;  %v3937_v15 = vld [vmem:[#allocation8 + $0x2c] ss:$16 sps:$4 sm:$0xff]  }
 0x10b   :  { %1282 = vmatprep.subr.bf16.mxu1 %v3934_v16  ;;  %v3982_v16 = vld [vmem:[#allocation10 + $0x64] ss:$16 sps:$4 sm:$0xff]  }
 0x174   :  { %v3649_v17 = vpop.f32.mrb[0].mxu1 }
 0x175   :  { %v3650_v19 = vpop.f32.mrb[1].mxu1 }
 0x176   :  { %v3651_v20 = vadd.f32 %v3650_v19, %v3649_v17  ;;  %v3652_v21 = vpop.f32.mrb[2].mxu1  ;;  %v3980_v17 = vld [vmem:[#allocation10 + $0x60] ss:$16 sps:$4 sm:$0xff]   ;;  %v3988_v19 = vld [vmem:[#allocation10 + $0x84] ss:$16 sps:$4 sm:$0xff]  }
 0x177   :  { %v3653_v22 = vpop.f32.mrb[3].mxu1 }
 0x178   :  { %v340_v23 = vadd.f32 %v3651_v20, %v3281_v18  ;;  %v3654_v24 = vadd.f32 %v3653_v22, %v3652_v21  ;;  %v3940_v20 = vld [vmem:[%s5248_s5 + $0xc] ss:$16 sps:$4 sm:$0xff]   ;;  %v3986_v21 = vld [vmem:[#allocation10 + $0x80] ss:$16 sps:$4 sm:$0xff]   ;;  %v3938_v22 = vld [vmem:[%s5248_s5 + $0x8] ss:$16 sps:$4 sm:$0xff]  }
 0x17a   :  { %v343_v25 = vadd.f32 %v3654_v24, %v3281_v18  ;;  %v346_v26 = vmax.f32 %v340_v23, 0.0  ;;  %v3693_v29 = vpop.f32.mrb[0].mxu0  ;;  %v3935_v18 = vld [vmem:[#allocation8 + $0x28] ss:$16 sps:$4 sm:$0xff]   ;;  %v3994_v24 = vld [vmem:[#allocation10 + $0xa4] ss:$16 sps:$4 sm:$0xff]  }
 0x17b   :  { %v3694_v30 = vpop.f32.mrb[1].mxu0  ;;  %v3943_v23 = vld [vmem:[%s5248_s5 + $0x2c] ss:$16 sps:$4 sm:$0xff]  }
 0x17c   :  { %v347_v27 = vmax.f32 %v343_v25, 0.0  ;;  %v3695_v31 = vadd.f32 %v3694_v30, %v3693_v29  ;;  %v3696_v32 = vpop.f32.mrb[2].mxu0  ;;  %v3992_v25 = vld [vmem:[#allocation10 + $0xa0] ss:$16 sps:$4 sm:$0xff]   ;;  %v3946_v29 = vld [vmem:[%s5248_s5 + $0x4c] ss:$16 sps:$4 sm:$0xff]  }
 0x17d   :  { %v3697_v33 = vpop.f32.mrb[3].mxu0  ;;  %v3998_v30 = vld [vmem:[#allocation10 + $0xc0] ss:$16 sps:$4 sm:$0xff]  }
 0x17e   :  { %v4938_v28 = vpack.c.bf16 %v347_v27, %v346_v26  ;;  %v3698_v34 = vadd.f32 %v3697_v33, %v3696_v32  ;;  %v3941_v26 = vld [vmem:[%s5248_s5 + $0x28] ss:$16 sps:$4 sm:$0xff]   ;;  %v4004_v33 = vld [vmem:[#allocation10 + $0xe0] ss:$16 sps:$4 sm:$0xff]  }
 0x17f   :  { %v4000_v27 = vld [vmem:[#allocation10 + $0xc4] ss:$16 sps:$4 sm:$0xff]  }
 0x180   :  { %1518 = vmatmul.mubr.bf16.vlgmr.msra.gmra.mrb[8].mxu0 %v4938_v28  ;;  %v4006_v32 = vld [vmem:[#allocation10 + $0xe4] ss:$16 sps:$4 sm:$0xff]  }
 0x181   :  { %2404 = vmatpush1.bf16.msra.mxu0 %v3962_v63  ;;  %v3989_v63 = vld [vmem:[#allocation10 + $0x88] ss:$16 sps:$4 sm:$0xff]  }
 0x182   :  { %2405 = vmatprep.subr.bf16.mxu0 %v3970_v1  ;;  %v3995_v1 = vld [vmem:[#allocation10 + $0xa8] ss:$16 sps:$4 sm:$0xff]  }
 0x185   :  { %2406 = vmatpush1.bf16.msra.mxu0 %v3968_v5  ;;  %v4015_v5 = vld [vmem:[#allocation10 + $0x10c] ss:$16 sps:$4 sm:$0xff]  }
 0x186   :  { %2407 = vmatprep.subr.bf16.mxu0 %v3976_v7  ;;  %v4021_v7 = vld [vmem:[#allocation10 + $0x12c] ss:$16 sps:$4 sm:$0xff]  }
 0x189   :  { %2408 = vmatpush1.bf16.msra.mxu0 %v3974_v12  ;;  %v4031_v12 = vld [vmem:[#allocation10 + $0x168] ss:$16 sps:$4 sm:$0xff]  }
 0x18a   :  { %2409 = vmatprep.subr.bf16.mxu0 %v3982_v16  ;;  %v4037_v16 = vld [vmem:[#allocation10 + $0x188] ss:$16 sps:$4 sm:$0xff]  }
 0x18d   :  { %2410 = vmatpush1.bf16.msra.mxu0 %v3980_v17  ;;  %v4045_v17 = vld [vmem:[#allocation10 + $0x1ac] ss:$16 sps:$4 sm:$0xff]  }
 0x18e   :  { %2411 = vmatprep.subr.bf16.mxu0 %v3988_v19  ;;  %v4046_v19 = vld [vmem:[#allocation10 + $0x1c0] ss:$16 sps:$4 sm:$0xff]  }
 0x191   :  { %2412 = vmatpush1.bf16.msra.mxu0 %v3986_v21  ;;  %v4051_v21 = vld [vmem:[#allocation10 + $0x1cc] ss:$16 sps:$4 sm:$0xff]  }
 0x192   :  { %2413 = vmatprep.subr.bf16.mxu0 %v3994_v24  ;;  %v4049_v24 = vld [vmem:[#allocation10 + $0x1c8] ss:$16 sps:$4 sm:$0xff]  }
 0x194   :  { %v3671_v35 = vpop.f32.mrb[4].mxu1 }
 0x195   :  { %v3672_v37 = vpop.f32.mrb[5].mxu1  ;;  %2414 = vmatpush1.bf16.msra.mxu0 %v3992_v25  ;;  %v4057_v25 = vld [vmem:[#allocation10 + $0x1ec] ss:$16 sps:$4 sm:$0xff]  }
 0x196   :  { %v3673_v39 = vadd.f32 %v3672_v37, %v3671_v35  ;;  %v3674_v40 = vpop.f32.mrb[6].mxu1  ;;  %2415 = vmatprep.subr.bf16.mxu0 %v4000_v27  ;;  %v4012_v35 = vld [vmem:[#allocation10 + $0x104] ss:$16 sps:$4 sm:$0xff]   ;;  %v4010_v37 = vld [vmem:[#allocation10 + $0x100] ss:$16 sps:$4 sm:$0xff]  }
 0x197   :  { %v3675_v41 = vpop.f32.mrb[7].mxu1  ;;  %v4055_v27 = vld [vmem:[#allocation10 + $0x1e8] ss:$16 sps:$4 sm:$0xff]  }
 0x198   :  { %v981_v42 = vadd.f32 %v3673_v39, %v3298_v36  ;;  %v3676_v43 = vadd.f32 %v3675_v41, %v3674_v40  ;;  %v3950_v39 = vld [vmem:[%s5248_s5 + $0x88] ss:$16 sps:$4 sm:$0xff]   ;;  %v3955_v41 = vld [vmem:[%s5248_s5 + $0xac] ss:$16 sps:$4 sm:$0xff]  }
 0x199   :  { %2416 = vmatpush1.bf16.msra.mxu0 %v3998_v30  ;;  %v4018_v40 = vld [vmem:[#allocation10 + $0x124] ss:$16 sps:$4 sm:$0xff]  }
 0x19a   :  { %v984_v44 = vadd.f32 %v3676_v43, %v3298_v36  ;;  %v1022_v45 = vadd.f32 %v3695_v31, %v981_v42  ;;  %v3737_v47 = vpop.f32.mrb[4].mxu0  ;;  %v3944_v31 = vld [vmem:[%s5248_s5 + $0x48] ss:$16 sps:$4 sm:$0xff]   ;;  %2417 = vmatprep.subr.bf16.mxu0 %v4006_v32  ;;  %v3952_v36 = vld [vmem:[%s5248_s5 + $0x8c] ss:$16 sps:$4 sm:$0xff]  }
 0x19b   :  { %v3738_v48 = vpop.f32.mrb[5].mxu0  ;;  %v4016_v42 = vld [vmem:[#allocation10 + $0x120] ss:$16 sps:$4 sm:$0xff]   ;;  %v3953_v43 = vld [vmem:[%s5248_s5 + $0xa8] ss:$16 sps:$4 sm:$0xff]  }
 0x19c   :  { %v1025_v46 = vadd.f32 %v3698_v34, %v984_v44  ;;  %v3739_v49 = vadd.f32 %v3738_v48, %v3737_v47  ;;  %v3740_v50 = vpop.f32.mrb[6].mxu0  ;;  %v3947_v34 = vld [vmem:[%s5248_s5 + $0x68] ss:$16 sps:$4 sm:$0xff]  }
 0x19d   :  { %v3741_v51 = vpop.f32.mrb[7].mxu0  ;;  %2418 = vmatpush1.bf16.msra.mxu0 %v4004_v33  ;;  %v4024_v44 = vld [vmem:[#allocation10 + $0x144] ss:$16 sps:$4 sm:$0xff]   ;;  %v1573_v33 = vlaneseq }
 0x19e   :  { %v3742_v52 = vadd.f32 %v3741_v51, %v3740_v50  ;;  %2419 = vmatprep.subr.bf16.mxu0 %v4012_v35  ;;  %v3956_v47 = vld [vmem:[%s5248_s5 + $0xc8] ss:$16 sps:$4 sm:$0xff]   ;;  %v4028_v50 = vld [vmem:[#allocation10 + $0x160] ss:$16 sps:$4 sm:$0xff]  }
 0x19f   :  { %v4030_v48 = vld [vmem:[#allocation10 + $0x164] ss:$16 sps:$4 sm:$0xff]  }
 0x1a0   :  { %v3959_v51 = vld [vmem:[%s5248_s5 + $0xe8] ss:$16 sps:$4 sm:$0xff]  }
 0x1a1   :  { %2420 = vmatpush1.bf16.msra.mxu0 %v4010_v37 }
 0x1a2   :  { %2421 = vmatprep.subr.bf16.mxu0 %v4018_v40 }
 0x1a5   :  { %2422 = vmatpush1.bf16.msra.mxu0 %v4016_v42 }
 0x1a6   :  { %2423 = vmatprep.subr.bf16.mxu0 %v4024_v44 }
 0x1b4   :  { %v3715_v53 = vpop.f32.mrb[8].mxu1 }
 0x1b5   :  { %v3716_v54 = vpop.f32.mrb[9].mxu1 }
 0x1b6   :  { %v3717_v55 = vadd.f32 %v3716_v54, %v3715_v53  ;;  %v3718_v56 = vpop.f32.mrb[10].mxu1  ;;  %v3967_v53 = vld [vmem:[#allocation10 + $0xc] ss:$16 sps:$4 sm:$0xff]   ;;  %v4034_v54 = vld [vmem:[#allocation10 + $0x180] ss:$16 sps:$4 sm:$0xff]  }
 0x1b7   :  { %v3719_v57 = vpop.f32.mrb[11].mxu1 }
 0x1b8   :  { %v1063_v58 = vadd.f32 %v3717_v55, %v1022_v45  ;;  %v3720_v59 = vadd.f32 %v3719_v57, %v3718_v56  ;;  %v3958_v45 = vld [vmem:[%s5248_s5 + $0xcc] ss:$16 sps:$4 sm:$0xff]  }
 0x1b9   :  { %v3965_v55 = vld [vmem:[#allocation10 + $0x8] ss:$16 sps:$4 sm:$0xff]   ;;  %v3973_v56 = vld [vmem:[#allocation10 + $0x2c] ss:$16 sps:$4 sm:$0xff]  }
 0x1ba   :  { %v1066_v60 = vadd.f32 %v3720_v59, %v1025_v46  ;;  %v1104_v61 = vadd.f32 %v3739_v49, %v1063_v58  ;;  %v4022_v46 = vld [vmem:[#allocation10 + $0x140] ss:$16 sps:$4 sm:$0xff]   ;;  %v3961_v49 = vld [vmem:[%s5248_s5 + $0xec] ss:$16 sps:$4 sm:$0xff]  }
 0x1bb   :  { %2424 = vmatpush1.bf16.msra.mxu0 %v4022_v46  ;;  %v3971_v57 = vld [vmem:[#allocation10 + $0x28] ss:$16 sps:$4 sm:$0xff]   ;;  %v3979_v58 = vld [vmem:[#allocation10 + $0x4c] ss:$16 sps:$4 sm:$0xff]  }
 0x1bc   :  { %v1107_v62 = vadd.f32 %v3742_v52, %v1066_v60  ;;  %2425 = vmatprep.subr.bf16.mxu0 %v4030_v48  ;;  %v4036_v52 = vld [vmem:[#allocation10 + $0x184] ss:$16 sps:$4 sm:$0xff]   ;;  %v3977_v59 = vld [vmem:[#allocation10 + $0x48] ss:$16 sps:$4 sm:$0xff]   ;;  %v3985_v60 = vld [vmem:[#allocation10 + $0x6c] ss:$16 sps:$4 sm:$0xff]  }
 0x1bf   :  { %2426 = vmatpush1.bf16.msra.mxu0 %v4028_v50 }
 0x1c0   :  { %2427 = vmatprep.subr.bf16.mxu0 %v4036_v52 }
 0x1c3   :  { %2428 = vmatpush1.bf16.msra.mxu0 %v4034_v54 }
 0x1d8   :  { %v1144_v2 = vpop.f32.mrb[12].mxu1 }
 0x1d9   :  { %v1145_v3 = vadd.f32 %v1144_v2, %v1104_v61  ;;  %v1146_v4 = vpop.f32.mrb[13].mxu1  ;;  %v3983_v61 = vld [vmem:[#allocation10 + $0x68] ss:$16 sps:$4 sm:$0xff]  }
 0x1da   :  { %v1147_v6 = vpop.f32.mrb[14].mxu1  ;;  %v4001_v2 = vld [vmem:[#allocation10 + $0xc8] ss:$16 sps:$4 sm:$0xff]  }
 0x1db   :  { %v1148_v8 = vadd.f32 %v1147_v6, %v1107_v62  ;;  %v1149_v9 = vpop.f32.mrb[15].mxu1  ;;  %v1151_v10 = vmax.f32 %v1145_v3, 0.0  ;;  %v3991_v62 = vld [vmem:[#allocation10 + $0x8c] ss:$16 sps:$4 sm:$0xff]   ;;  %v4007_v4 = vld [vmem:[#allocation10 + $0xe8] ss:$16 sps:$4 sm:$0xff]  }
 0x1dc   :  { %v4009_v3 = vld [vmem:[#allocation10 + $0xec] ss:$16 sps:$4 sm:$0xff]   ;;  %v4013_v6 = vld [vmem:[#allocation10 + $0x108] ss:$16 sps:$4 sm:$0xff]  }
 0x1dd   :  { %v1152_v11 = vmax.f32 %v1148_v8, 0.0  ;;  %v4019_v8 = vld [vmem:[#allocation10 + $0x128] ss:$16 sps:$4 sm:$0xff]   ;;  %v4027_v9 = vld [vmem:[#allocation10 + $0x14c] ss:$16 sps:$4 sm:$0xff]  }
 0x1df   :  { %v1186_v14 = vpack.c.bf16 %v1152_v11, %v1151_v10  ;;  %v4025_v10 = vld [vmem:[#allocation10 + $0x148] ss:$16 sps:$4 sm:$0xff]   ;;  %v4033_v11 = vld [vmem:[#allocation10 + $0x16c] ss:$16 sps:$4 sm:$0xff]  }
 0x1e1   :  { %3381 = vmatmul.mubr.msk.bf16.vlgmr.msra.gmra.mrb[16].mxu1 %vm1235_vm3, %v1186_v14 }
 0x1e2   :  { %1283 = vmatpush1.bf16.msra.mxu1 %v3932_v13  ;;  %1314 = vmatprep.mubr.bf16.mxu1 %v4465_v38  ;;  %v4039_v13 = vld [vmem:[#allocation10 + $0x18c] ss:$16 sps:$4 sm:$0xff]  }
 0x1e3   :  { %1284 = vmatprep.subr.bf16.mxu1 %v3937_v15  ;;  %v4040_v15 = vld [vmem:[#allocation10 + $0x1a0] ss:$16 sps:$4 sm:$0xff]  }
 0x1e6   :  { %1285 = vmatpush1.bf16.msra.mxu1 %v3935_v18  ;;  %v4048_v18 = vld [vmem:[#allocation10 + $0x1c4] ss:$16 sps:$4 sm:$0xff]  }
 0x1e7   :  { %1528 = vmatprep.subr.bf16.mxu1 %v3940_v20  ;;  %v4043_v20 = vld [vmem:[#allocation10 + $0x1a8] ss:$16 sps:$4 sm:$0xff]  }
 0x1e9   :  { %3382 = vmatmul.mubr.msk.bf16.vlgmr.msra.gmra.mrb[20].mxu1 %vm1235_vm3, %v1186_v14  ;;  %v4042_v14 = vld [vmem:[#allocation10 + $0x1a4] ss:$16 sps:$4 sm:$0xff]  }
 0x1ea   :  { %1529 = vmatpush1.bf16.msra.mxu1 %v3938_v22  ;;  %1560 = vmatprep.mubr.bf16.mxu1 %v4465_v38  ;;  %v3949_v38 = vld [vmem:[%s5248_s5 + $0x6c] ss:$16 sps:$4 sm:$0xff]   ;;  %v4054_v22 = vld [vmem:[#allocation10 + $0x1e4] ss:$16 sps:$4 sm:$0xff]  }
 0x1eb   :  { %1530 = vmatprep.subr.bf16.mxu1 %v3943_v23  ;;  %2429 = vmatprep.subr.bf16.mxu0 %v4042_v14  ;;  %v4052_v23 = vld [vmem:[#allocation10 + $0x1e0] ss:$16 sps:$4 sm:$0xff]  }
 0x1ec   :  { %2430 = vmatpush1.bf16.msra.mxu0 %v4040_v15  ;;  %v4088_v14 = vld [vmem:[#allocation10 + $0x2a0] ss:$16 sps:$4 sm:$0xff]   ;;  %v4091_v15 = vld [vmem:[#allocation10 + $0x2a8] ss:$16 sps:$4 sm:$0xff]  }
 0x1ed   :  { %2431 = vmatprep.subr.bf16.mxu0 %v4048_v18 }
 0x1ee   :  { %1531 = vmatpush1.bf16.msra.mxu1 %v3941_v26  ;;  %v4060_v26 = vld [vmem:[#allocation10 + $0x204] ss:$16 sps:$4 sm:$0xff]  }
 0x1ef   :  { %1532 = vmatprep.subr.bf16.mxu1 %v3946_v29  ;;  %v4063_v29 = vld [vmem:[#allocation10 + $0x20c] ss:$16 sps:$4 sm:$0xff]  }
 0x1f0   :  { %2432 = vmatpush1.bf16.msra.mxu0 %v4046_v19  ;;  %v4094_v19 = vld [vmem:[#allocation10 + $0x2c0] ss:$16 sps:$4 sm:$0xff]  }
 0x1f1   :  { %2433 = vmatprep.subr.bf16.mxu0 %v4054_v22  ;;  %v4102_v22 = vld [vmem:[#allocation10 + $0x2e4] ss:$16 sps:$4 sm:$0xff]  }
 0x1f2   :  { %1533 = vmatpush1.bf16.msra.mxu1 %v3944_v31 }
 0x1f3   :  { %1534 = vmatprep.subr.bf16.mxu1 %v3949_v38 }
 0x1f4   :  { %2434 = vmatpush1.bf16.msra.mxu0 %v4052_v23  ;;  %v4105_v23 = vld [vmem:[#allocation10 + $0x2ec] ss:$16 sps:$4 sm:$0xff]  }
 0x1f5   :  { %2446 = vmatprep.subr.bf16.mxu0 %v4060_v26  ;;  %v4100_v26 = vld [vmem:[#allocation10 + $0x2e0] ss:$16 sps:$4 sm:$0xff]  }
 0x1f6   :  { %1535 = vmatpush1.bf16.msra.mxu1 %v3947_v34  ;;  %v4994_v34 = vshrl.u32 %v1573_v33, 7 }
 0x1f7   :  { %1536 = vmatprep.subr.bf16.mxu1 %v3952_v36  ;;  %v5002_v36 = vld [vmem:[%s5250_s7] sm:$0xf] }
 0x1f8   :  { %v4997_v35 = vsub.s32 0, %v4994_v34  ;;  %v5005_v37 = vsub.s32 1, %v4994_v34  ;;  %v1583_v18 = vsub.s32 2, %v4994_v34 }
 0x1fa   :  { %1537 = vmatpush1.bf16.msra.mxu1 %v3950_v39  ;;  %v1576_v39 = vrot.slane %v5002_v36, %v4997_v35 }
 0x1fb   :  { %1538 = vmatprep.subr.bf16.mxu1 %v3955_v41  ;;  %v1580_v41 = vrot.slane %v5002_v36, %v5005_v37 }
 0x1fe   :  { %1539 = vmatpush1.bf16.msra.mxu1 %v3953_v43 }
 0x1ff   :  { %1540 = vmatprep.subr.bf16.mxu1 %v3958_v45 }
 0x202   :  { %1541 = vmatpush1.bf16.msra.mxu1 %v3956_v47 }
 0x203   :  { %1542 = vmatprep.subr.bf16.mxu1 %v3961_v49 }
 0x206   :  { %1543 = vmatpush1.bf16.msra.mxu1 %v3959_v51 }
 0x207   :  { %2489 = vmatprep.subr.bf16.mxu1 %v3967_v53 }
 0x209   :  { %1561 = vmatmul.mubr.bf16.vlgmr.msra.gmra.mrb[20].mxu1 %v4938_v28  ;;  %v4003_v28 = vld [vmem:[#allocation10 + $0xcc] ss:$16 sps:$4 sm:$0xff]  }
 0x20a   :  { %2490 = vmatpush1.bf16.msra.mxu1 %v3965_v55 }
 0x20b   :  { %2491 = vmatprep.subr.bf16.mxu1 %v3973_v56 }
 0x20e   :  { %2492 = vmatpush1.bf16.msra.mxu1 %v3971_v57 }
 0x20f   :  { %2493 = vmatprep.subr.bf16.mxu1 %v3979_v58 }
 0x212   :  { %2494 = vmatpush1.bf16.msra.mxu1 %v3977_v59  ;;  %v4058_v59 = vld [vmem:[#allocation10 + $0x200] ss:$16 sps:$4 sm:$0xff]  }
 0x213   :  { %2495 = vmatprep.subr.bf16.mxu1 %v3985_v60  ;;  %v4061_v60 = vld [vmem:[#allocation10 + $0x208] ss:$16 sps:$4 sm:$0xff]  }
 0x216   :  { %2496 = vmatpush1.bf16.msra.mxu1 %v3983_v61  ;;  %v4066_v61 = vld [vmem:[#allocation10 + $0x224] ss:$16 sps:$4 sm:$0xff]  }
 0x217   :  { %2497 = vmatprep.subr.bf16.mxu1 %v3991_v62  ;;  %v4069_v62 = vld [vmem:[#allocation10 + $0x22c] ss:$16 sps:$4 sm:$0xff]  }
 0x21a   :  { %2498 = vmatpush1.bf16.msra.mxu1 %v3989_v63  ;;  %v4064_v63 = vld [vmem:[#allocation10 + $0x220] ss:$16 sps:$4 sm:$0xff]  }
 0x21b   :  { %2499 = vmatprep.subr.bf16.mxu1 %v3997_v0  ;;  %v4067_v0 = vld [vmem:[#allocation10 + $0x228] ss:$16 sps:$4 sm:$0xff]  }
 0x21e   :  { %2500 = vmatpush1.bf16.msra.mxu1 %v3995_v1  ;;  %v4072_v1 = vld [vmem:[#allocation10 + $0x244] ss:$16 sps:$4 sm:$0xff]  }
 0x21f   :  { %2501 = vmatprep.subr.bf16.mxu1 %v4003_v28  ;;  %v4075_v28 = vld [vmem:[#allocation10 + $0x24c] ss:$16 sps:$4 sm:$0xff]  }
 0x222   :  { %2502 = vmatpush1.bf16.msra.mxu1 %v4001_v2  ;;  %v4070_v2 = vld [vmem:[#allocation10 + $0x240] ss:$16 sps:$4 sm:$0xff]  }
 0x223   :  { %2503 = vmatprep.subr.bf16.mxu1 %v4009_v3  ;;  %v4073_v3 = vld [vmem:[#allocation10 + $0x248] ss:$16 sps:$4 sm:$0xff]  }
 0x226   :  { %2504 = vmatpush1.bf16.msra.mxu1 %v4007_v4  ;;  %v4078_v4 = vld [vmem:[#allocation10 + $0x264] ss:$16 sps:$4 sm:$0xff]  }
 0x227   :  { %2505 = vmatprep.subr.bf16.mxu1 %v4015_v5  ;;  %v4081_v5 = vld [vmem:[#allocation10 + $0x26c] ss:$16 sps:$4 sm:$0xff]  }
 0x22a   :  { %2506 = vmatpush1.bf16.msra.mxu1 %v4013_v6  ;;  %v4076_v6 = vld [vmem:[#allocation10 + $0x260] ss:$16 sps:$4 sm:$0xff]  }
 0x22b   :  { %2507 = vmatprep.subr.bf16.mxu1 %v4021_v7  ;;  %v4079_v7 = vld [vmem:[#allocation10 + $0x268] ss:$16 sps:$4 sm:$0xff]  }
 0x22e   :  { %2508 = vmatpush1.bf16.msra.mxu1 %v4019_v8  ;;  %v4084_v8 = vld [vmem:[#allocation10 + $0x284] ss:$16 sps:$4 sm:$0xff]  }
 0x22f   :  { %2509 = vmatprep.subr.bf16.mxu1 %v4027_v9  ;;  %v4087_v9 = vld [vmem:[#allocation10 + $0x28c] ss:$16 sps:$4 sm:$0xff]  }
 0x232   :  { %2510 = vmatpush1.bf16.msra.mxu1 %v4025_v10  ;;  %v4082_v10 = vld [vmem:[#allocation10 + $0x280] ss:$16 sps:$4 sm:$0xff]  }
 0x233   :  { %2511 = vmatprep.subr.bf16.mxu1 %v4033_v11  ;;  %v4085_v11 = vld [vmem:[#allocation10 + $0x288] ss:$16 sps:$4 sm:$0xff]  }
 0x236   :  { %2512 = vmatpush1.bf16.msra.mxu1 %v4031_v12  ;;  %v4090_v12 = vld [vmem:[#allocation10 + $0x2a4] ss:$16 sps:$4 sm:$0xff]  }
 0x237   :  { %2513 = vmatprep.subr.bf16.mxu1 %v4039_v13  ;;  %v4093_v13 = vld [vmem:[#allocation10 + $0x2ac] ss:$16 sps:$4 sm:$0xff]  }
 0x23a   :  { %2514 = vmatpush1.bf16.msra.mxu1 %v4037_v16  ;;  %v4096_v16 = vld [vmem:[#allocation10 + $0x2c4] ss:$16 sps:$4 sm:$0xff]  }
 0x23b   :  { %2515 = vmatprep.subr.bf16.mxu1 %v4045_v17  ;;  %v4099_v17 = vld [vmem:[#allocation10 + $0x2cc] ss:$16 sps:$4 sm:$0xff]  }
 0x23e   :  { %2516 = vmatpush1.bf16.msra.mxu1 %v4043_v20  ;;  %v4097_v20 = vld [vmem:[#allocation10 + $0x2c8] ss:$16 sps:$4 sm:$0xff]  }
 0x23f   :  { %2517 = vmatprep.subr.bf16.mxu1 %v4051_v21  ;;  %v1587_v21 = vsub.s32 3, %v4994_v34 }
 0x242   :  { %2518 = vmatpush1.bf16.msra.mxu1 %v4049_v24  ;;  %v1584_v24 = vrot.slane %v5002_v36, %v1583_v18 }
 0x243   :  { %2519 = vmatprep.subr.bf16.mxu1 %v4057_v25  ;;  %v1588_v25 = vrot.slane %v5002_v36, %v1587_v21  ;;  %v4114_v36 = vld [vmem:[#allocation10 + $0x324] ss:$16 sps:$4 sm:$0xff]  }
 0x246   :  { %2520 = vmatpush1.bf16.msra.mxu1 %v4055_v27  ;;  %v4103_v27 = vld [vmem:[#allocation10 + $0x2e8] ss:$16 sps:$4 sm:$0xff]  }
 0x247   :  { %2532 = vmatprep.subr.bf16.mxu1 %v4063_v29  ;;  %v4108_v29 = vld [vmem:[#allocation10 + $0x304] ss:$16 sps:$4 sm:$0xff]  }
 0x253   :  { %v1519_v30 = vpop.f32.mrb[8].mxu0 }
 0x254   :  { %v1521_v31 = vpop.f32.mrb[9].mxu0 }
 0x255   :  { %v1523_v32 = vpop.f32.mrb[10].mxu0 }
 0x256   :  { %v1525_v38 = vpop.f32.mrb[11].mxu0 }
 0x2b4   :  { %v1273_v40 = vpop.f32.mrb[16].mxu1 }
 0x2b5   :  { %v1520_v42 = vadd.f32 %v1519_v30, %v1273_v40  ;;  %v1275_v43 = vpop.f32.mrb[17].mxu1  ;;  %v4111_v30 = vld [vmem:[#allocation10 + $0x30c] ss:$16 sps:$4 sm:$0xff]   ;;  %v4106_v40 = vld [vmem:[#allocation10 + $0x300] ss:$16 sps:$4 sm:$0xff]  }
 0x2b6   :  { %v1522_v44 = vadd.f32 %v1521_v31, %v1275_v43  ;;  %v1277_v45 = vpop.f32.mrb[18].mxu1 }
 0x2b7   :  { %v1593_v46 = vadd.f32 %v1576_v39, %v1520_v42  ;;  %v1524_v47 = vadd.f32 %v1523_v32, %v1277_v45  ;;  %v1279_v48 = vpop.f32.mrb[19].mxu1 }
 0x2b8   :  { %v1594_v49 = vadd.f32 %v1580_v41, %v1522_v44  ;;  %v1526_v50 = vadd.f32 %v1525_v38, %v1279_v48  ;;  %v4117_v44 = vld [vmem:[#allocation10 + $0x32c] ss:$16 sps:$4 sm:$0xff]  }
 0x2b9   :  { %v1597_v51 = vadd.f32 %v1576_v39, %v1524_v47  ;;  %v1601_v53 = vmax.f32 %v1593_v46, 0.0 }
 0x2ba   :  { %v1598_v52 = vadd.f32 %v1580_v41, %v1526_v50  ;;  %v1602_v55 = vmax.f32 %v1594_v49, 0.0  ;;  %v4109_v41 = vld [vmem:[#allocation10 + $0x308] ss:$16 sps:$4 sm:$0xff]   ;;  %v4112_v50 = vld [vmem:[#allocation10 + $0x320] ss:$16 sps:$4 sm:$0xff]  }
 0x2bb   :  { %v1605_v54 = vmax.f32 %v1597_v51, 0.0 }
 0x2bc   :  { %v1606_v56 = vmax.f32 %v1598_v52, 0.0  ;;  %v4115_v52 = vld [vmem:[#allocation10 + $0x328] ss:$16 sps:$4 sm:$0xff]  }
 0x2bd   :  { %v1609_v57 = vpack.c.bf16 %v1605_v54, %v1601_v53  ;;  %v4120_v54 = vld [vmem:[#allocation10 + $0x344] ss:$16 sps:$4 sm:$0xff]  }
 0x2be   :  { %v1610_v58 = vpack.c.bf16 %v1606_v56, %v1602_v55  ;;  %v4123_v55 = vld [vmem:[#allocation10 + $0x34c] ss:$16 sps:$4 sm:$0xff]   ;;  %v4118_v56 = vld [vmem:[#allocation10 + $0x340] ss:$16 sps:$4 sm:$0xff]  }
 0x2c0   :  { %2435 = vmatprep.mubr.bf16.mxu0 %v1610_v58  ;;  %2521 = vmatprep.mubr.bf16.mxu1 %v1610_v58  ;;  %v4126_v58 = vld [vmem:[#allocation10 + $0x364] ss:$16 sps:$4 sm:$0xff]  }
 0x2c1   :  { %2436 = vmatmul.mubr.bf16.vlgmr.msra.gmra.mrb[12].mxu0 %v1609_v57  ;;  %2522 = vmatmul.mubr.bf16.vlgmr.msra.gmra.mrb[24].mxu1 %v1609_v57  ;;  %v4121_v57 = vld [vmem:[#allocation10 + $0x348] ss:$16 sps:$4 sm:$0xff]  }
 0x2c2   :  { %2447 = vmatpush1.bf16.msra.mxu0 %v4058_v59  ;;  %2533 = vmatpush1.bf16.msra.mxu1 %v4061_v60  ;;  %v4129_v59 = vld [vmem:[#allocation10 + $0x36c] ss:$16 sps:$4 sm:$0xff]   ;;  %v4124_v60 = vld [vmem:[#allocation10 + $0x360] ss:$16 sps:$4 sm:$0xff]  }
 0x2c3   :  { %2448 = vmatprep.subr.bf16.mxu0 %v4066_v61  ;;  %2534 = vmatprep.subr.bf16.mxu1 %v4069_v62  ;;  %v4127_v61 = vld [vmem:[#allocation10 + $0x368] ss:$16 sps:$4 sm:$0xff]   ;;  %v4132_v62 = vld [vmem:[#allocation10 + $0x384] ss:$16 sps:$4 sm:$0xff]  }
 0x2c6   :  { %2449 = vmatpush1.bf16.msra.mxu0 %v4064_v63  ;;  %2535 = vmatpush1.bf16.msra.mxu1 %v4067_v0  ;;  %v4135_v63 = vld [vmem:[#allocation10 + $0x38c] ss:$16 sps:$4 sm:$0xff]   ;;  %v4130_v0 = vld [vmem:[#allocation10 + $0x380] ss:$16 sps:$4 sm:$0xff]  }
 0x2c7   :  { %2450 = vmatprep.subr.bf16.mxu0 %v4072_v1  ;;  %2536 = vmatprep.subr.bf16.mxu1 %v4075_v28  ;;  %v4133_v1 = vld [vmem:[#allocation10 + $0x388] ss:$16 sps:$4 sm:$0xff]   ;;  %v4138_v28 = vld [vmem:[#allocation10 + $0x3a4] ss:$16 sps:$4 sm:$0xff]  }
 0x2ca   :  { %2451 = vmatpush1.bf16.msra.mxu0 %v4070_v2  ;;  %2537 = vmatpush1.bf16.msra.mxu1 %v4073_v3  ;;  %v4141_v2 = vld [vmem:[#allocation10 + $0x3ac] ss:$16 sps:$4 sm:$0xff]   ;;  %v4136_v3 = vld [vmem:[#allocation10 + $0x3a0] ss:$16 sps:$4 sm:$0xff]  }
 0x2cb   :  { %2452 = vmatprep.subr.bf16.mxu0 %v4078_v4  ;;  %2538 = vmatprep.subr.bf16.mxu1 %v4081_v5  ;;  %v4139_v4 = vld [vmem:[#allocation10 + $0x3a8] ss:$16 sps:$4 sm:$0xff]   ;;  %v4144_v5 = vld [vmem:[#allocation10 + $0x3c4] ss:$16 sps:$4 sm:$0xff]  }
 0x2ce   :  { %2453 = vmatpush1.bf16.msra.mxu0 %v4076_v6  ;;  %2539 = vmatpush1.bf16.msra.mxu1 %v4079_v7  ;;  %v4147_v6 = vld [vmem:[#allocation10 + $0x3cc] ss:$16 sps:$4 sm:$0xff]   ;;  %v4142_v7 = vld [vmem:[#allocation10 + $0x3c0] ss:$16 sps:$4 sm:$0xff]  }
 0x2cf   :  { %2454 = vmatprep.subr.bf16.mxu0 %v4084_v8  ;;  %2540 = vmatprep.subr.bf16.mxu1 %v4087_v9  ;;  %v4145_v8 = vld [vmem:[#allocation10 + $0x3c8] ss:$16 sps:$4 sm:$0xff]   ;;  %v4150_v9 = vld [vmem:[#allocation10 + $0x3e4] ss:$16 sps:$4 sm:$0xff]  }
 0x2d2   :  { %2455 = vmatpush1.bf16.msra.mxu0 %v4082_v10  ;;  %2541 = vmatpush1.bf16.msra.mxu1 %v4085_v11  ;;  %v4153_v10 = vld [vmem:[#allocation10 + $0x3ec] ss:$16 sps:$4 sm:$0xff]   ;;  %v4148_v11 = vld [vmem:[#allocation10 + $0x3e0] ss:$16 sps:$4 sm:$0xff]  }
 0x2d3   :  { %2456 = vmatprep.subr.bf16.mxu0 %v4090_v12  ;;  %2542 = vmatprep.subr.bf16.mxu1 %v4093_v13  ;;  %v4151_v12 = vld [vmem:[#allocation10 + $0x3e8] ss:$16 sps:$4 sm:$0xff]  }
 0x2d4   :  { %v4156_v13 = vld [vmem:[%s5253_s10 + $0x4] ss:$8 sps:$4 sm:$0xff]  }
 0x2d6   :  { %2457 = vmatpush1.bf16.msra.mxu0 %v4088_v14  ;;  %2543 = vmatpush1.bf16.msra.mxu1 %v4091_v15  ;;  %v4154_v14 = vld [vmem:[%s5253_s10] ss:$8 sps:$4 sm:$0xff]   ;;  %v4159_v15 = vld [vmem:[%s5253_s10 + $0x14] ss:$8 sps:$4 sm:$0xff]  }
 0x2d7   :  { %2458 = vmatprep.subr.bf16.mxu0 %v4096_v16  ;;  %2544 = vmatprep.subr.bf16.mxu1 %v4099_v17  ;;  %v4157_v16 = vld [vmem:[%s5253_s10 + $0x10] ss:$8 sps:$4 sm:$0xff]   ;;  %v4162_v17 = vld [vmem:[%s5253_s10 + $0x24] ss:$8 sps:$4 sm:$0xff]  }
 0x2da   :  { %2459 = vmatpush1.bf16.msra.mxu0 %v4094_v19  ;;  %2545 = vmatpush1.bf16.msra.mxu1 %v4097_v20  ;;  %v4160_v19 = vld [vmem:[%s5253_s10 + $0x20] ss:$8 sps:$4 sm:$0xff]   ;;  %v4165_v20 = vld [vmem:[%s5253_s10 + $0x34] ss:$8 sps:$4 sm:$0xff]  }
 0x2db   :  { %2460 = vmatprep.subr.bf16.mxu0 %v4102_v22  ;;  %2546 = vmatprep.subr.bf16.mxu1 %v4105_v23  ;;  %v4163_v22 = vld [vmem:[%s5253_s10 + $0x30] ss:$8 sps:$4 sm:$0xff]   ;;  %v4168_v23 = vld [vmem:[%s5253_s10 + $0x44] ss:$8 sps:$4 sm:$0xff]  }
 0x2dc   :  { %v1562_v31 = vpop.f32.mrb[20].mxu1 }
 0x2dd   :  { %v1595_v32 = vadd.f32 %v1584_v24, %v1562_v31  ;;  %v1564_v38 = vpop.f32.mrb[21].mxu1  ;;  %v4175_v31 = vld [vmem:[%s5253_s10 + $0x70] ss:$8 sps:$4 sm:$0xff]  }
 0x2de   :  { %v1596_v33 = vadd.f32 %v1588_v25, %v1564_v38  ;;  %v1566_v39 = vpop.f32.mrb[22].mxu1  ;;  %2461 = vmatpush1.bf16.msra.mxu0 %v4100_v26  ;;  %2547 = vmatpush1.bf16.msra.mxu1 %v4103_v27  ;;  %v4169_v26 = vld [vmem:[%s5253_s10 + $0x50] ss:$8 sps:$4 sm:$0xff]   ;;  %v4174_v27 = vld [vmem:[%s5253_s10 + $0x64] ss:$8 sps:$4 sm:$0xff]  }
 0x2df   :  { %v1599_v42 = vadd.f32 %v1584_v24, %v1566_v39  ;;  %v1568_v43 = vpop.f32.mrb[23].mxu1  ;;  %2462 = vmatprep.subr.bf16.mxu0 %v4108_v29  ;;  %2548 = vmatprep.subr.bf16.mxu1 %v4111_v30  ;;  %v1603_v46 = vmax.f32 %v1595_v32, 0.0  ;;  %v4166_v24 = vld [vmem:[%s5253_s10 + $0x40] ss:$8 sps:$4 sm:$0xff]   ;;  %v4177_v30 = vld [vmem:[%s5253_s10 + $0x74] ss:$8 sps:$4 sm:$0xff]  }
 0x2e0   :  { %v1600_v45 = vadd.f32 %v1588_v25, %v1568_v43  ;;  %v1604_v48 = vmax.f32 %v1596_v33, 0.0  ;;  %v4171_v25 = vld [vmem:[%s5253_s10 + $0x54] ss:$8 sps:$4 sm:$0xff]   ;;  %v4172_v29 = vld [vmem:[%s5253_s10 + $0x60] ss:$8 sps:$4 sm:$0xff]  }
 0x2e1   :  { %v1607_v47 = vmax.f32 %v1599_v42, 0.0  ;;  %v4180_v32 = vld [vmem:[%s5253_s10 + $0x84] ss:$8 sps:$4 sm:$0xff]   ;;  %v4178_v38 = vld [vmem:[%s5253_s10 + $0x80] ss:$8 sps:$4 sm:$0xff]  }
 0x2e2   :  { %v1608_v49 = vmax.f32 %v1600_v45, 0.0  ;;  %2463 = vmatpush1.bf16.msra.mxu0 %v4106_v40  ;;  %2549 = vmatpush1.bf16.msra.mxu1 %v4109_v41  ;;  %v4183_v33 = vld [vmem:[%s5253_s10 + $0x94] ss:$8 sps:$4 sm:$0xff]   ;;  %v4181_v39 = vld [vmem:[%s5253_s10 + $0x90] ss:$8 sps:$4 sm:$0xff]  }
 0x2e3   :  { %v1611_v51 = vpack.c.bf16 %v1607_v47, %v1603_v46  ;;  %2464 = vmatprep.subr.bf16.mxu0 %v4114_v36  ;;  %2550 = vmatprep.subr.bf16.mxu1 %v4117_v44  ;;  %v4186_v40 = vld [vmem:[%s5253_s10 + $0xa4] ss:$8 sps:$4 sm:$0xff]   ;;  %v4184_v41 = vld [vmem:[%s5253_s10 + $0xa0] ss:$8 sps:$4 sm:$0xff]   ;;  %v4189_v42 = vld [vmem:[%s5253_s10 + $0xb4] ss:$8 sps:$4 sm:$0xff]  }
 0x2e4   :  { %v1612_v53 = vpack.c.bf16 %v1608_v49, %v1604_v48  ;;  %v4187_v43 = vld [vmem:[%s5253_s10 + $0xb0] ss:$8 sps:$4 sm:$0xff]   ;;  %v4192_v36 = vld [vmem:[%s5253_s10 + $0xc4] ss:$8 sps:$4 sm:$0xff]   ;;  %v4190_v44 = vld [vmem:[%s5253_s10 + $0xc0] ss:$8 sps:$4 sm:$0xff]  }
 0x2e5   :  { %v4195_v45 = vld [vmem:[%s5253_s10 + $0xd4] ss:$8 sps:$4 sm:$0xff]   ;;  %v4193_v46 = vld [vmem:[%s5253_s10 + $0xd0] ss:$8 sps:$4 sm:$0xff]   ;;  %v4198_v47 = vld [vmem:[%s5253_s10 + $0xe4] ss:$8 sps:$4 sm:$0xff]  }
 0x2e6   :  { %2465 = vmatpush1.bf16.msra.mxu0 %v4112_v50  ;;  %2478 = vmatprep.mubr.bf16.mxu0 %v1612_v53  ;;  %v4196_v48 = vld [vmem:[%s5253_s10 + $0xe0] ss:$8 sps:$4 sm:$0xff]   ;;  %v4201_v49 = vld [vmem:[%s5253_s10 + $0xf4] ss:$8 sps:$4 sm:$0xff]   ;;  %v4199_v50 = vld [vmem:[%s5253_s10 + $0xf0] ss:$8 sps:$4 sm:$0xff]  }
 0x2e7   :  { %2551 = vmatpush1.bf16.msra.mxu1 %v4115_v52  ;;  %2564 = vmatprep.mubr.bf16.mxu1 %v1612_v53  ;;  %v4250_v52 = vld [vmem:[#allocation13 + $0x40] sm:$0xff]  }
 0x2e8   :  { %2466 = vmatprep.subr.bf16.mxu0 %v4120_v54  ;;  %2552 = vmatprep.subr.bf16.mxu1 %v4123_v55  ;;  %v4251_v53 = vld [vmem:[#allocation13] sm:$0xff]   ;;  %v4252_v54 = vld [vmem:[#allocation13 + $0x48] sm:$0xff]  }
 0x2e9   :  { %v4253_v55 = vld [vmem:[#allocation13 + $0x8] sm:$0xff]  }
 0x2ea   :  { %2467 = vmatpush1.bf16.msra.mxu0 %v4118_v56  ;;  %v4254_v56 = vld [vmem:[#allocation13 + $0x50] sm:$0xff]  }
 0x2eb   :  { %2553 = vmatpush1.bf16.msra.mxu1 %v4121_v57  ;;  %2468 = vmatprep.subr.bf16.mxu0 %v4126_v58  ;;  %v4255_v57 = vld [vmem:[#allocation13 + $0x10] sm:$0xff]   ;;  %v4256_v58 = vld [vmem:[#allocation13 + $0x58] sm:$0xff]  }
 0x2ec   :  { %2554 = vmatprep.subr.bf16.mxu1 %v4129_v59  ;;  %v4257_v59 = vld [vmem:[#allocation13 + $0x18] sm:$0xff]  }
 0x2ee   :  { %2469 = vmatpush1.bf16.msra.mxu0 %v4124_v60  ;;  %v4258_v60 = vld [vmem:[#allocation13 + $0x60] sm:$0xff]  }
 0x2ef   :  { %2555 = vmatpush1.bf16.msra.mxu1 %v4127_v61  ;;  %2470 = vmatprep.subr.bf16.mxu0 %v4132_v62  ;;  %v4259_v61 = vld [vmem:[#allocation13 + $0x20] sm:$0xff]   ;;  %v4260_v62 = vld [vmem:[#allocation13 + $0x68] sm:$0xff]  }
 0x2f0   :  { %2556 = vmatprep.subr.bf16.mxu1 %v4135_v63  ;;  %v1741_v63 = vld [vmem:[%s5252_s9] sm:$0xf] }
 0x2f2   :  { %2471 = vmatpush1.bf16.msra.mxu0 %v4130_v0  ;;  %v1746_v0 = vrot.slane %v1741_v63, %v4997_v35 }
 0x2f3   :  { %2557 = vmatpush1.bf16.msra.mxu1 %v4133_v1  ;;  %2472 = vmatprep.subr.bf16.mxu0 %v4138_v28  ;;  %v1754_v1 = vrot.slane %v1741_v63, %v1583_v18  ;;  %v1750_v28 = vrot.slane %v1741_v63, %v5005_v37 }
 0x2f4   :  { %2558 = vmatprep.subr.bf16.mxu1 %v4141_v2  ;;  %v1758_v2 = vrot.slane %v1741_v63, %v1587_v21  ;;  %v4249_v63 = vld [vmem:[%s5253_s10 + $0x1f4] ss:$8 sps:$4 sm:$0xff]  }
 0x2f6   :  { %2473 = vmatpush1.bf16.msra.mxu0 %v4136_v3 }
 0x2f7   :  { %2559 = vmatpush1.bf16.msra.mxu1 %v4139_v4  ;;  %2474 = vmatprep.subr.bf16.mxu0 %v4144_v5 }
 0x2f8   :  { %2560 = vmatprep.subr.bf16.mxu1 %v4147_v6 }
 0x2fa   :  { %2475 = vmatpush1.bf16.msra.mxu0 %v4142_v7 }
 0x2fb   :  { %2561 = vmatpush1.bf16.msra.mxu1 %v4145_v8  ;;  %2476 = vmatprep.subr.bf16.mxu0 %v4150_v9 }
 0x2fc   :  { %2562 = vmatprep.subr.bf16.mxu1 %v4153_v10 }
 0x2fe   :  { %2477 = vmatpush1.bf16.msra.mxu0 %v4148_v11 }
 0x2ff   :  { %2563 = vmatpush1.bf16.msra.mxu1 %v4151_v12  ;;  %2983 = vmatprep.subr.bf16.mxu0 %v4156_v13 }
 0x300   :  { %3743 = vmatprep.subr.bf16.mxu1 %v4250_v52  ;;  %v4229_v52 = vld [vmem:[%s5253_s10 + $0x190] ss:$8 sps:$4 sm:$0xff]  }
 0x301   :  { %2479 = vmatmul.mubr.bf16.vlgmr.msra.gmra.mrb[12].mxu0 %v1611_v51 }
 0x302   :  { %2565 = vmatmul.mubr.bf16.vlgmr.msra.gmra.mrb[24].mxu1 %v1611_v51  ;;  %2984 = vmatpush1.bf16.msra.mxu0 %v4154_v14  ;;  %v4204_v51 = vld [vmem:[%s5253_s10 + $0x104] ss:$8 sps:$4 sm:$0xff]  }
 0x303   :  { %2985 = vmatprep.subr.bf16.mxu0 %v4159_v15  ;;  %3744 = vmatpush3.bf16.msra.mxu1 %v4251_v53  ;;  %v4234_v53 = vld [vmem:[%s5253_s10 + $0x1a4] ss:$8 sps:$4 sm:$0xff]  }
 0x304   :  { %3745 = vmatprep.subr.bf16.mxu1 %v4252_v54  ;;  %v4232_v54 = vld [vmem:[%s5253_s10 + $0x1a0] ss:$8 sps:$4 sm:$0xff]  }
 0x306   :  { %2986 = vmatpush1.bf16.msra.mxu0 %v4157_v16 }
 0x307   :  { %2987 = vmatprep.subr.bf16.mxu0 %v4162_v17  ;;  %3746 = vmatpush3.bf16.msra.mxu1 %v4253_v55  ;;  %v4237_v55 = vld [vmem:[%s5253_s10 + $0x1b4] ss:$8 sps:$4 sm:$0xff]  }
 0x308   :  { %3747 = vmatprep.subr.bf16.mxu1 %v4254_v56  ;;  %v4235_v56 = vld [vmem:[%s5253_s10 + $0x1b0] ss:$8 sps:$4 sm:$0xff]  }
 0x30a   :  { %2988 = vmatpush1.bf16.msra.mxu0 %v4160_v19 }
 0x30b   :  { %2989 = vmatprep.subr.bf16.mxu0 %v4165_v20  ;;  %3748 = vmatpush3.bf16.msra.mxu1 %v4255_v57  ;;  %v4240_v57 = vld [vmem:[%s5253_s10 + $0x1c4] ss:$8 sps:$4 sm:$0xff]  }
 0x30c   :  { %3749 = vmatprep.subr.bf16.mxu1 %v4256_v58  ;;  %v4238_v58 = vld [vmem:[%s5253_s10 + $0x1c0] ss:$8 sps:$4 sm:$0xff]  }
 0x30e   :  { %2990 = vmatpush1.bf16.msra.mxu0 %v4163_v22 }
 0x30f   :  { %2991 = vmatprep.subr.bf16.mxu0 %v4168_v23  ;;  %3750 = vmatpush3.bf16.msra.mxu1 %v4257_v59  ;;  %v4243_v59 = vld [vmem:[%s5253_s10 + $0x1d4] ss:$8 sps:$4 sm:$0xff]  }
 0x310   :  { %3751 = vmatprep.subr.bf16.mxu1 %v4258_v60  ;;  %v4241_v60 = vld [vmem:[%s5253_s10 + $0x1d0] ss:$8 sps:$4 sm:$0xff]  }
 0x312   :  { %2992 = vmatpush1.bf16.msra.mxu0 %v4166_v24 }
 0x313   :  { %2993 = vmatprep.subr.bf16.mxu0 %v4171_v25  ;;  %3752 = vmatpush3.bf16.msra.mxu1 %v4259_v61  ;;  %v4246_v61 = vld [vmem:[%s5253_s10 + $0x1e4] ss:$8 sps:$4 sm:$0xff]  }
 0x314   :  { %3753 = vmatprep.subr.bf16.mxu1 %v4260_v62  ;;  %v4244_v62 = vld [vmem:[%s5253_s10 + $0x1e0] ss:$8 sps:$4 sm:$0xff]  }
 0x316   :  { %2994 = vmatpush1.bf16.msra.mxu0 %v4169_v26 }
 0x317   :  { %2995 = vmatprep.subr.bf16.mxu0 %v4174_v27 }
 0x31a   :  { %2996 = vmatpush1.bf16.msra.mxu0 %v4172_v29 }
 0x31b   :  { %2997 = vmatprep.subr.bf16.mxu0 %v4177_v30  ;;  %v4202_v30 = vld [vmem:[%s5253_s10 + $0x100] ss:$8 sps:$4 sm:$0xff]  }
 0x31e   :  { %2998 = vmatpush1.bf16.msra.mxu0 %v4175_v31 }
 0x31f   :  { %2999 = vmatprep.subr.bf16.mxu0 %v4180_v32  ;;  %v4207_v32 = vld [vmem:[%s5253_s10 + $0x114] ss:$8 sps:$4 sm:$0xff]  }
 0x322   :  { %3000 = vmatpush1.bf16.msra.mxu0 %v4178_v38  ;;  %v4205_v38 = vld [vmem:[%s5253_s10 + $0x110] ss:$8 sps:$4 sm:$0xff]  }
 0x323   :  { %3001 = vmatprep.subr.bf16.mxu0 %v4183_v33  ;;  %v4210_v33 = vld [vmem:[%s5253_s10 + $0x124] ss:$8 sps:$4 sm:$0xff]  }
 0x326   :  { %3002 = vmatpush1.bf16.msra.mxu0 %v4181_v39  ;;  %v4208_v39 = vld [vmem:[%s5253_s10 + $0x120] ss:$8 sps:$4 sm:$0xff]  }
 0x327   :  { %3003 = vmatprep.subr.bf16.mxu0 %v4186_v40  ;;  %v4213_v40 = vld [vmem:[%s5253_s10 + $0x134] ss:$8 sps:$4 sm:$0xff]  }
 0x32a   :  { %3004 = vmatpush1.bf16.msra.mxu0 %v4184_v41  ;;  %v4211_v41 = vld [vmem:[%s5253_s10 + $0x130] ss:$8 sps:$4 sm:$0xff]  }
 0x32b   :  { %3005 = vmatprep.subr.bf16.mxu0 %v4189_v42  ;;  %v4216_v42 = vld [vmem:[%s5253_s10 + $0x144] ss:$8 sps:$4 sm:$0xff]  }
 0x32e   :  { %3006 = vmatpush1.bf16.msra.mxu0 %v4187_v43  ;;  %v4214_v43 = vld [vmem:[%s5253_s10 + $0x140] ss:$8 sps:$4 sm:$0xff]  }
 0x32f   :  { %3007 = vmatprep.subr.bf16.mxu0 %v4192_v36  ;;  %v4219_v36 = vld [vmem:[%s5253_s10 + $0x154] ss:$8 sps:$4 sm:$0xff]  }
 0x332   :  { %3008 = vmatpush1.bf16.msra.mxu0 %v4190_v44  ;;  %v4217_v44 = vld [vmem:[%s5253_s10 + $0x150] ss:$8 sps:$4 sm:$0xff]  }
 0x333   :  { %3009 = vmatprep.subr.bf16.mxu0 %v4195_v45  ;;  %v4222_v45 = vld [vmem:[%s5253_s10 + $0x164] ss:$8 sps:$4 sm:$0xff]  }
 0x336   :  { %3010 = vmatpush1.bf16.msra.mxu0 %v4193_v46  ;;  %v4220_v46 = vld [vmem:[%s5253_s10 + $0x160] ss:$8 sps:$4 sm:$0xff]  }
 0x337   :  { %3011 = vmatprep.subr.bf16.mxu0 %v4198_v47  ;;  %v4225_v47 = vld [vmem:[%s5253_s10 + $0x174] ss:$8 sps:$4 sm:$0xff]  }
 0x33a   :  { %3012 = vmatpush1.bf16.msra.mxu0 %v4196_v48  ;;  %v4223_v48 = vld [vmem:[%s5253_s10 + $0x170] ss:$8 sps:$4 sm:$0xff]  }
 0x33b   :  { %3013 = vmatprep.subr.bf16.mxu0 %v4201_v49  ;;  %v4228_v49 = vld [vmem:[%s5253_s10 + $0x184] ss:$8 sps:$4 sm:$0xff]  }
 0x33e   :  { %3014 = vmatpush1.bf16.msra.mxu0 %v4199_v50  ;;  %v4226_v50 = vld [vmem:[%s5253_s10 + $0x180] ss:$8 sps:$4 sm:$0xff]  }
 0x33f   :  { %3026 = vmatprep.subr.bf16.mxu0 %v4204_v51  ;;  %v4231_v51 = vld [vmem:[%s5253_s10 + $0x194] ss:$8 sps:$4 sm:$0xff]  }
 0x3d4   :  { %v2480_v3 = vpop.f32.mrb[12].mxu0 }
 0x3d5   :  { %v3769_v4 = vadd.f32 %v2480_v3, %v1746_v0  ;;  %v2566_v5 = vpop.f32.mrb[24].mxu1  ;;  %v2482_v6 = vpop.f32.mrb[13].mxu0  ;;  %v4264_v3 = vld [vmem:[#allocation13 + $0x78] sm:$0xff]  }
 0x3d6   :  { %v3773_v7 = vadd.f32 %v2566_v5, %v1754_v1  ;;  %v3770_v8 = vadd.f32 %v2482_v6, %v1750_v28  ;;  %v2568_v9 = vpop.f32.mrb[25].mxu1  ;;  %v2484_v10 = vpop.f32.mrb[14].mxu0  ;;  %v2651_v5 = vld [vmem:[#allocation11] sm:$0x3] }
 0x3d7   :  { %v3774_v11 = vadd.f32 %v2568_v9, %v1758_v2  ;;  %v3771_v12 = vadd.f32 %v2484_v10, %v1746_v0  ;;  %v2570_v13 = vpop.f32.mrb[26].mxu1  ;;  %v2486_v14 = vpop.f32.mrb[15].mxu0  ;;  %v2575_v17 = vmax.f32 %v3769_v4, 0.0  ;;  %v4247_v0 = vld [vmem:[%s5253_s10 + $0x1f0] ss:$8 sps:$4 sm:$0xff]   ;;  %v4265_v4 = vld [vmem:[#allocation13 + $0x38] sm:$0xff]   ;;  %v2656_v6 = vrot.slane %v2651_v5, %v4997_v35 }
 0x3d8   :  { %v3775_v15 = vadd.f32 %v2570_v13, %v1754_v1  ;;  %v3772_v16 = vadd.f32 %v2486_v14, %v1750_v28  ;;  %v2572_v18 = vpop.f32.mrb[27].mxu1  ;;  %v2577_v34 = vmax.f32 %v3773_v7, 0.0  ;;  %v2576_v21 = vmax.f32 %v3770_v8, 0.0  ;;  %v4261_v1 = vld [vmem:[#allocation13 + $0x28] sm:$0xff]   ;;  %v4262_v28 = vld [vmem:[#allocation13 + $0x70] sm:$0xff]  }
 0x3d9   :  { %v2579_v19 = vmax.f32 %v3771_v12, 0.0  ;;  %v3776_v20 = vadd.f32 %v2572_v18, %v1758_v2  ;;  %v2578_v24 = vmax.f32 %v3774_v11, 0.0  ;;  %3754 = vmatpush3.bf16.msra.mxu1 %v4261_v1  ;;  %v4263_v2 = vld [vmem:[#allocation13 + $0x30] sm:$0xff]   ;;  %v2660_v7 = vrot.slane %v2651_v5, %v5005_v37 }
 0x3da   :  { %v2581_v22 = vmax.f32 %v3775_v15, 0.0  ;;  %v2580_v23 = vmax.f32 %v3772_v16, 0.0  ;;  %3755 = vmatprep.subr.bf16.mxu1 %v4262_v28 }
 0x3db   :  { %v2583_v25 = vpack.c.bf16 %v2579_v19, %v2575_v17  ;;  %v2582_v26 = vmax.f32 %v3776_v20, 0.0 }
 0x3dc   :  { %v5127_v27 = vpack.c.bf16 %v2581_v22, %v2577_v34  ;;  %v2584_v29 = vpack.c.bf16 %v2580_v23, %v2576_v21  ;;  %v3607_v23 = vld [vmem:[%s5256_s13] ss:$0 sm:$0xff] }
 0x3dd   :  { %v2586_v31 = vpack.c.bf16 %v2582_v26, %v2578_v24  ;;  %3756 = vmatpush3.bf16.msra.mxu1 %v4263_v2 }
 0x3de   :  { %3015 = vmatprep.mubr.bf16.mxu0 %v2584_v29  ;;  %3757 = vmatprep.subr.bf16.mxu1 %v4264_v3 }
 0x3df   :  { %3016 = vmatmul.mubr.bf16.vlgmr.msra.gmra.mrb[16].mxu0 %v2583_v25 }
 0x3e0   :  { %3027 = vmatpush1.bf16.msra.mxu0 %v4202_v30  ;;  %3058 = vmatprep.mubr.bf16.mxu0 %v2586_v31 }
 0x3e1   :  { %3028 = vmatprep.subr.bf16.mxu0 %v4207_v32  ;;  %3758 = vmatpush3.bf16.msra.mxu1 %v4265_v4 }
 0x3e4   :  { %3029 = vmatpush1.bf16.msra.mxu0 %v4205_v38 }
 0x3e5   :  { %3030 = vmatprep.subr.bf16.mxu0 %v4210_v33 }
 0x3e8   :  { %3031 = vmatpush1.bf16.msra.mxu0 %v4208_v39 }
 0x3e9   :  { %3032 = vmatprep.subr.bf16.mxu0 %v4213_v40 }
 0x3ec   :  { %3033 = vmatpush1.bf16.msra.mxu0 %v4211_v41 }
 0x3ed   :  { %3034 = vmatprep.subr.bf16.mxu0 %v4216_v42 }
 0x3f0   :  { %3035 = vmatpush1.bf16.msra.mxu0 %v4214_v43 }
 0x3f1   :  { %3036 = vmatprep.subr.bf16.mxu0 %v4219_v36 }
 0x3f4   :  { %3037 = vmatpush1.bf16.msra.mxu0 %v4217_v44 }
 0x3f5   :  { %3038 = vmatprep.subr.bf16.mxu0 %v4222_v45 }
 0x3f8   :  { %3039 = vmatpush1.bf16.msra.mxu0 %v4220_v46 }
 0x3f9   :  { %3040 = vmatprep.subr.bf16.mxu0 %v4225_v47 }
 0x3fc   :  { %3041 = vmatpush1.bf16.msra.mxu0 %v4223_v48 }
 0x3fd   :  { %3042 = vmatprep.subr.bf16.mxu0 %v4228_v49 }
 0x400   :  { %3043 = vmatpush1.bf16.msra.mxu0 %v4226_v50 }
 0x401   :  { %3044 = vmatprep.subr.bf16.mxu0 %v4231_v51 }
 0x404   :  { %3045 = vmatpush1.bf16.msra.mxu0 %v4229_v52 }
 0x405   :  { %3046 = vmatprep.subr.bf16.mxu0 %v4234_v53 }
 0x408   :  { %3047 = vmatpush1.bf16.msra.mxu0 %v4232_v54 }
 0x409   :  { %3048 = vmatprep.subr.bf16.mxu0 %v4237_v55 }
 0x40c   :  { %3049 = vmatpush1.bf16.msra.mxu0 %v4235_v56 }
 0x40d   :  { %3050 = vmatprep.subr.bf16.mxu0 %v4240_v57 }
 0x410   :  { %3051 = vmatpush1.bf16.msra.mxu0 %v4238_v58 }
 0x411   :  { %3052 = vmatprep.subr.bf16.mxu0 %v4243_v59 }
 0x414   :  { %3053 = vmatpush1.bf16.msra.mxu0 %v4241_v60 }
 0x415   :  { %3054 = vmatprep.subr.bf16.mxu0 %v4246_v61 }
 0x418   :  { %3055 = vmatpush1.bf16.msra.mxu0 %v4244_v62 }
 0x419   :  { %3056 = vmatprep.subr.bf16.mxu0 %v4249_v63 }
 0x41c   :  { %3057 = vmatpush1.bf16.msra.mxu0 %v4247_v0 }
 0x41f   :  { %3059 = vmatmul.mubr.bf16.vlgmr.msra.gmra.mrb[16].mxu0 %v5127_v27 }
 0x4f2   :  { %v3060_v8 = vpop.f32.mrb[16].mxu0 }
 0x4f3   :  { %v3777_v9 = vadd.f32 %v3060_v8, %v2656_v6  ;;  %v3062_v10 = vpop.f32.mrb[17].mxu0 }
 0x4f4   :  { %v3778_v11 = vadd.f32 %v3062_v10, %v2660_v7  ;;  %v3064_v12 = vpop.f32.mrb[18].mxu0 }
 0x4f5   :  { %v3779_v13 = vadd.f32 %v3064_v12, %v2656_v6  ;;  %v3066_v14 = vpop.f32.mrb[19].mxu0  ;;  %v3069_v16 = vmax.f32 %v3777_v9, 0.0 }
 0x4f6   :  { %v3780_v15 = vadd.f32 %v3066_v14, %v2660_v7  ;;  %v3070_v17 = vmax.f32 %v3778_v11, 0.0 }
 0x4f7   :  { %v3071_v18 = vmax.f32 %v3779_v13, 0.0 }
 0x4f8   :  { %v3072_v19 = vmax.f32 %v3780_v15, 0.0 }
 0x4f9   :  { %v3073_v20 = vpack.c.bf16 %v3071_v18, %v3069_v16 }
 0x4fa   :  { %v3074_v34 = vpack.c.bf16 %v3072_v19, %v3070_v17 }
 0x4fc   :  { %3242 = vmatprep.mubr.bf16.mxu1 %v3074_v34 }
 0x4fd   :  { %3243 = vmatmul.mubr.bf16.vlgmr.msra.gmra.mrb[28].mxu1 %v3073_v20 }
 0x5d0   :  { %v3759_v21 = vpop.f32.mrb[28].mxu1 }
 0x5d1   :  { %v3760_v35 = vpop.f32.mrb[29].mxu1 }
 0x5d2   :  { %v3761_v22 = vadd.f32 %v3760_v35, %v3759_v21  ;;  %v3762_v37 = vpop.f32.mrb[30].mxu1 }
 0x5d3   :  { %v3763_v24 = vpop.f32.mrb[31].mxu1 }
 0x5d4   :  { %v3764_v25 = vadd.f32 %v3763_v24, %v3762_v37  ;;  %v3245_v26 = vadd.f32 %v3761_v22, %v3607_v23 }
 0x5d6   :  { %v3248_v27 = vadd.f32 %v3764_v25, %v3607_v23 }
 0x5d8   :  { %v3631_v29 = vpack.c.bf16 %v3248_v27, %v3245_v26 }
 0x5da   :  { %3632 = vst [vmem:[#allocation14] sm:$0xff] %v3631_v29  }
 0x5db   :  { %4431 = shalt.err (!%p4428_p4)
}
 0x5dc   :  { %s4432_s13 = scalar_lea.hbm %s5257_s14, 128 }
 0x5dd   :  { %p4433_p5 = scmp.ne.s32.totalorder %s5257_s14, %s4432_s13  ;;  %p4436_p6 = scmp.lt.u32.totalorder %s4432_s13, %s5257_s14 }
 0x5df   :  { %p4438_p7 = pnand %p4436_p6, %p4433_p5 }
 0x5e1   :  { %4441 = shalt.err (!%p4438_p7)
}
 0x5e2   :  { %3272 = dma.vmem_to_hbm [thread:$0]  %s3267_s22, 128, %s5257_s14, [#allocation4], %s5260_s8, %s5260_s8, %s4454_s24  }
 0x5e3   :  { %4450 = dma.done.wait [#allocation4], 128  }
 0x5e4   :  { %4451 = vsyncadd [#allocation4], 4294967168 }
 0x5e5   :  { %3276 = vsyncpa [#allocation3], 1 }
 0x5e6   :  { %3277 = vsyncpa [#allocation6], 1 }
 0x5e7   :  { %3278 = vsyncpa [#allocation9], 1 }
 0x5e8   :  { %3279 = vsyncpa [#allocation12], 1 }
 0x5e9   :  { %3280 = vsyncpa [#allocation4], 1 }

</bundles_post_ra>
